<compile_context>
chip_gen: v5e
topology: v5e:2x2
jax: 0.10.0
libtpu: 0.0.40
codegen_flags: <defaults>
</compile_context>

<pallas_src>
import math

import jax
import jax.numpy as jnp
from jax import lax
from jax.experimental import pallas as pl
from jax.experimental.pallas import tpu as pltpu


_IMG = 28
_POOLED = 14
_IN_FEATURES = _IMG * _IMG        # 784 (raw pixels; pool is folded into fc1)
_HIDDEN = 128
_OUT = 10
_TILE_N_DEFAULT = 2048            # per-gen sweet spot: v6e/v7x 2048-4096, v5e ok w/ raised limit
_VMEM_LIMIT_BYTES = 40 << 20      # explicit scoped-VMEM budget; safe on v5e/v6e/v7x


def _round_up(x, m):
    return ((x + m - 1) // m) * m


def poolmlp_kernel(x_ref, w1_ref, b1_ref, w2_ref, b2_ref, o_ref):
    # x_ref: (tile, 784) f32 or bf16 -- raw flattened pixels.  The 2x2 average pool is
    # already folded into w1_ref, so fc1 is a single 784x128 MXU matmul.
    x = x_ref[...].astype(jnp.float32)            # bf16-from-upstream promoted in VMEM (free)
    h = jnp.dot(x, w1_ref[...],
                preferred_element_type=jnp.float32,
                precision=lax.Precision.HIGHEST) + b1_ref[...]
    h = jnp.where(h >= 0, h, 0.1 * h)             # LeakyReLU(0.1)
    out = jnp.dot(h, w2_ref[...],
                  preferred_element_type=jnp.float32,
                  precision=lax.Precision.HIGHEST) + b2_ref[...]
    o_ref[...] = out.astype(o_ref.dtype)


def fold_pool_into_fc1(w1):
    """(196,128) fc1 weight -> (784,128) weight with AvgPool2d(2,2)+Flatten folded in."""
    q = jnp.arange(_IN_FEATURES)
    r, c = q // _IMG, q % _IMG
    pool_idx = (r // 2) * _POOLED + (c // 2)      # source pixel -> pooled pixel
    return 0.25 * w1[pool_idx, :]                 # (784, 128)


def prepare_params(w1, b1, w2, b2):
    """Run ONCE per weight update (outside the per-step forward): fold the pool into fc1."""
    return fold_pool_into_fc1(w1), b1, w2, b2


def pool_mlp_forward(x_nchw, w1_folded, b1, w2, b2, *, tile_n=_TILE_N_DEFAULT):
    """x_nchw: (N, 1, 28, 28) float32 or bfloat16.  w1_folded: (784,128) from prepare_params.

    Returns (N, 10) float32.
    """
    N = x_nchw.shape[0]
    x_flat = x_nchw.reshape(N, _IN_FEATURES)      # pure reshape, no copy pass

    # Tile selection: aim for >= 2 grid steps (keeps both v7x TensorCores busy under
    # dimension_semantics=("parallel",)), rows in 8-sublane multiples, capped at tile_n.
    if N <= 8:
        tile = N                                  # single block; block dim == full dim is legal
    else:
        tile = min(tile_n, _round_up(pl.cdiv(N, 2), 8))
        tile = max(8, _round_up(tile, 8))

    grid = (pl.cdiv(N, tile),)                    # partial trailing block handled by Pallas

    flops = 2 * N * (_IN_FEATURES * _HIDDEN + _HIDDEN * _OUT)
    bytes_accessed = (x_flat.dtype.itemsize * N * _IN_FEATURES
                      + 4 * (N * _OUT
                             + _IN_FEATURES * _HIDDEN + _HIDDEN
                             + _HIDDEN * _OUT + _OUT))

    out = pl.pallas_call(
        poolmlp_kernel,
        out_shape=jax.ShapeDtypeStruct((N, _OUT), jnp.float32),
        grid=grid,
        in_specs=[
            pl.BlockSpec((tile, _IN_FEATURES), lambda i: (i, 0)),       # x tile
            pl.BlockSpec((_IN_FEATURES, _HIDDEN), lambda i: (0, 0)),    # folded W1 (resident)
            pl.BlockSpec((1, _HIDDEN), lambda i: (0, 0)),               # b1 (resident)
            pl.BlockSpec((_HIDDEN, _OUT), lambda i: (0, 0)),            # W2 (resident)
            pl.BlockSpec((1, _OUT), lambda i: (0, 0)),                  # b2 (resident)
        ],
        out_specs=pl.BlockSpec((tile, _OUT), lambda i: (i, 0)),         # 10-lane out kept in HBM
        compiler_params=pltpu.CompilerParams(
            dimension_semantics=("parallel",),
            vmem_limit_bytes=_VMEM_LIMIT_BYTES),
        cost_estimate=pl.CostEstimate(
            flops=flops, transcendentals=0, bytes_accessed=bytes_accessed),
    )(x_flat, w1_folded, b1, w2, b2)

    return out


def init_params(seed=0):
    """Deterministic kaiming_normal_(a=0.1) weights, zero biases (synthetic init)."""
    key = jax.random.PRNGKey(seed)
    k1, k2 = jax.random.split(key)
    gain = math.sqrt(2.0 / (1.0 + 0.1 ** 2))
    # fc1: torch weight shape (128, 196), fan_in = 196.  Stored transposed (196, 128).
    std1 = gain / math.sqrt(196)
    w1 = jax.random.normal(k1, (196, 128), dtype=jnp.float32) * std1
    b1 = jnp.zeros((1, 128), dtype=jnp.float32)
    # fc2: torch weight shape (10, 128), fan_in = 128.  Stored transposed (128, 10).
    std2 = gain / math.sqrt(128)
    w2 = jax.random.normal(k2, (128, 10), dtype=jnp.float32) * std2
    b2 = jnp.zeros((1, 10), dtype=jnp.float32)
    return w1, b1, w2, b2


def reference_forward(x_nchw, w1, b1, w2, b2):
    """Plain-JAX reference reproducing the PyTorch forward exactly (pool -> fc1 -> fc2)."""
    N = x_nchw.shape[0]
    x = x_nchw.astype(jnp.float32).reshape(N, 28, 28)
    pooled = x.reshape(N, 14, 2, 14, 2).mean(axis=(2, 4)).reshape(N, 196)
    h = pooled @ w1 + b1
    h = jnp.where(h >= 0, h, 0.1 * h)
    return h @ w2 + b2


if __name__ == "__main__":
    w1, b1, w2, b2 = init_params(seed=0)
    # Fold the pool into fc1 ONCE (per weight update), outside the forward.
    w1_folded, b1, w2, b2 = prepare_params(w1, b1, w2, b2)

    # 1) Small single-block check.
    N = 2
    x = jax.random.normal(jax.random.PRNGKey(0), (N, 1, 28, 28), dtype=jnp.float32)
    out = jax.block_until_ready(pool_mlp_forward(x, w1_folded, b1, w2, b2))
    ref = reference_forward(x, w1, b1, w2, b2)
    assert out.shape == (N, 10)
    # Generous tolerance covers the pool-fold reassociation; with HIGHEST-precision dots
    # the observed deviation is ~1e-5.
    assert jnp.allclose(out, ref, atol=2e-2, rtol=2e-2), "mismatch vs reference"

    # 2) Remainder-N path: grid of 3 with a partial trailing block (no wrapper-side pad).
    N2 = 20
    x2 = jax.random.normal(jax.random.PRNGKey(1), (N2, 1, 28, 28), dtype=jnp.float32)
    out2 = jax.block_until_ready(pool_mlp_forward(x2, w1_folded, b1, w2, b2, tile_n=8))
    ref2 = reference_forward(x2, w1, b1, w2, b2)
    assert out2.shape == (N2, 10)
    assert jnp.allclose(out2, ref2, atol=2e-2, rtol=2e-2), "mismatch vs reference (remainder)"

    # 3) bf16-from-upstream path (no wrapper-side cast; kernel promotes in VMEM).
    N3 = 24
    x3 = jax.random.normal(jax.random.PRNGKey(2), (N3, 1, 28, 28), dtype=jnp.bfloat16)
    out3 = jax.block_until_ready(pool_mlp_forward(x3, w1_folded, b1, w2, b2))
    ref3 = reference_forward(x3, w1, b1, w2, b2)
    assert out3.shape == (N3, 10)
    assert jnp.allclose(out3, ref3, atol=2e-2, rtol=2e-2), "mismatch vs reference (bf16)"

    print("KERNEL_OK")
</pallas_src>

<mosaic_0001>
module attributes {stable_mosaic.version = 11 : i64} {
  func.func @poolmlp_kernel(%arg0: i32, %arg1: memref<2x784xf32, #tpu.memory_space<vmem>>, %arg2: memref<784x128xf32, #tpu.memory_space<vmem>>, %arg3: memref<1x128xf32, #tpu.memory_space<vmem>>, %arg4: memref<128x10xf32, #tpu.memory_space<vmem>>, %arg5: memref<1x10xf32, #tpu.memory_space<vmem>>, %arg6: memref<2x10xf32, #tpu.memory_space<vmem>>) attributes {dimension_semantics = [#tpu.dimension_semantics<parallel>], iteration_bounds = array<i64: 1>, scalar_prefetch = 0 : i64, scratch_operands = 0 : i64, tpu.core_type = #tpu.core_type<tc>, window_params = [{transform_indices = @transform_0, window_bounds = array<i64: 2, 784>}, {pipeline_mode = #tpu.pipeline_mode<synchronous>, transform_indices = @transform_1, window_bounds = array<i64: 784, 128>}, {pipeline_mode = #tpu.pipeline_mode<synchronous>, transform_indices = @transform_2, window_bounds = array<i64: 1, 128>}, {pipeline_mode = #tpu.pipeline_mode<synchronous>, transform_indices = @transform_3, window_bounds = array<i64: 128, 10>}, {pipeline_mode = #tpu.pipeline_mode<synchronous>, transform_indices = @transform_4, window_bounds = array<i64: 1, 10>}, {transform_indices = @transform_5, window_bounds = array<i64: 2, 10>}]} {
    %c0 = arith.constant 0 : index
    %c0_0 = arith.constant 0 : index
    %0 = vector.load %arg1[%c0, %c0_0] : memref<2x784xf32, #tpu.memory_space<vmem>>, vector<2x784xf32>
    %c0_1 = arith.constant 0 : index
    %c0_2 = arith.constant 0 : index
    %1 = vector.load %arg2[%c0_1, %c0_2] : memref<784x128xf32, #tpu.memory_space<vmem>>, vector<784x128xf32>
    %cst = arith.constant dense<0.000000e+00> : vector<2x128xf32>
    %2 = tpu.matmul %0, %1, %cst {dimension_numbers = #tpu.dot_dimension_numbers<[1], [0], [0], [1], [0, 0, 1, 1], [], []>, precision = #tpu.contract_precision<fp32>} : vector<2x784xf32>, vector<784x128xf32>, vector<2x128xf32> -> vector<2x128xf32>
    %c0_3 = arith.constant 0 : index
    %c0_4 = arith.constant 0 : index
    %3 = vector.load %arg3[%c0_3, %c0_4] : memref<1x128xf32, #tpu.memory_space<vmem>>, vector<1x128xf32>
    %4 = vector.broadcast %3 : vector<1x128xf32> to vector<2x128xf32>
    %5 = arith.addf %2, %4 : vector<2x128xf32>
    %cst_5 = arith.constant 0.000000e+00 : f32
    %6 = vector.broadcast %cst_5 : f32 to vector<2x128xf32>
    %7 = arith.cmpf oge, %5, %6 : vector<2x128xf32>
    %cst_6 = arith.constant 1.000000e-01 : f32
    %8 = vector.broadcast %cst_6 : f32 to vector<2x128xf32>
    %9 = arith.mulf %8, %5 : vector<2x128xf32>
    %10 = arith.select %7, %5, %9 : vector<2x128xi1>, vector<2x128xf32>
    %c0_7 = arith.constant 0 : index
    %c0_8 = arith.constant 0 : index
    %11 = vector.load %arg4[%c0_7, %c0_8] : memref<128x10xf32, #tpu.memory_space<vmem>>, vector<128x10xf32>
    %cst_9 = arith.constant dense<0.000000e+00> : vector<2x10xf32>
    %12 = tpu.matmul %10, %11, %cst_9 {dimension_numbers = #tpu.dot_dimension_numbers<[1], [0], [0], [1], [0, 0, 1, 1], [], []>, precision = #tpu.contract_precision<fp32>} : vector<2x128xf32>, vector<128x10xf32>, vector<2x10xf32> -> vector<2x10xf32>
    %c0_10 = arith.constant 0 : index
    %c0_11 = arith.constant 0 : index
    %13 = vector.load %arg5[%c0_10, %c0_11] : memref<1x10xf32, #tpu.memory_space<vmem>>, vector<1x10xf32>
    %14 = vector.broadcast %13 : vector<1x10xf32> to vector<2x10xf32>
    %15 = arith.addf %12, %14 : vector<2x10xf32>
    %c0_12 = arith.constant 0 : index
    %c0_13 = arith.constant 0 : index
    %16 = vector.load %arg6[%c0_12, %c0_13] : memref<2x10xf32, #tpu.memory_space<vmem>>, vector<2x10xf32>
    tpu.vector_store %arg6[%c0_12, %c0_13], %15 {strides = array<i32>} : memref<2x10xf32, #tpu.memory_space<vmem>>, vector<2x10xf32>,
    return
  }
  func.func @transform_0(%arg0: i32) -> (i32, i32) {
    %c0_i32 = arith.constant 0 : i32
    %c0_i32_0 = arith.constant 0 : i32
    return %arg0, %c0_i32 : i32, i32
  }
  func.func @transform_1(%arg0: i32) -> (i32, i32) {
    %c0_i32 = arith.constant 0 : i32
    %c0_i32_0 = arith.constant 0 : i32
    %c0_i32_1 = arith.constant 0 : i32
    return %c0_i32, %c0_i32_0 : i32, i32
  }
  func.func @transform_2(%arg0: i32) -> (i32, i32) {
    %c0_i32 = arith.constant 0 : i32
    %c0_i32_0 = arith.constant 0 : i32
    %c0_i32_1 = arith.constant 0 : i32
    return %c0_i32, %c0_i32_0 : i32, i32
  }
  func.func @transform_3(%arg0: i32) -> (i32, i32) {
    %c0_i32 = arith.constant 0 : i32
    %c0_i32_0 = arith.constant 0 : i32
    %c0_i32_1 = arith.constant 0 : i32
    return %c0_i32, %c0_i32_0 : i32, i32
  }
  func.func @transform_4(%arg0: i32) -> (i32, i32) {
    %c0_i32 = arith.constant 0 : i32
    %c0_i32_0 = arith.constant 0 : i32
    %c0_i32_1 = arith.constant 0 : i32
    return %c0_i32, %c0_i32_0 : i32, i32
  }
  func.func @transform_5(%arg0: i32) -> (i32, i32) {
    %c0_i32 = arith.constant 0 : i32
    %c0_i32_0 = arith.constant 0 : i32
    return %arg0, %c0_i32 : i32, i32
  }
}

</mosaic_0001>

<bundles_post_ra>
// kernel: tpu_custom_call.1
= control target key start
LH: loop header
LB: loop body
LE: loop exit
PB: predicated region body
PF: predicated region fallthrough
CT: control target
= control target key end

     0   :  { %10 = vsyncpa [#allocation3], 0  ;;  %s4672_s0 = inlined_call_operand.vmem [shape: f32[2,784], index: 0, kind: input, shape index: {}]   ;;  %s4673_s1 = inlined_call_operand.hbm [shape: f32[784,128], index: 1, kind: input, shape index: {}]   ;;  %s4674_s2 = inlined_call_operand.vmem [shape: f32[1,128], index: 2, kind: input, shape index: {}]   ;;  %s4675_s3 = inlined_call_operand.vmem [shape: f32[128,10], index: 3, kind: input, shape index: {}]   ;;  %s4676_s4 = inlined_call_operand.vmem [shape: f32[1,10], index: 4, kind: input, shape index: {}]   ;;  %s4677_s5 = inlined_call_operand.hbm [shape: f32[2,10], index: 5, kind: output, shape index: {}]  }
   0x1   :  { %11 = vsyncpa [#allocation4], 0  ;;  %s18_s20 = sshll.u32 %s4673_s1, 4  ;;  %s2808_s21 = smov [#allocation2]   ;;  %s19_s20 = int_to_ptr.hbm [resolvable:$true] %s18_s20 }
   0x2   :  { %s20_s22 = sshll.u32 %s2808_s21, 4  ;;  %s2809_s23 = smov 128   ;;  %s21_s22 = int_to_ptr.vmem [resolvable:$true] %s20_s22 }
   0x3   :  { %s2810_s24 = smov 8  }
   0x4   :  { %26 = dma.hbm_to_vmem [thread:$0]  %s19_s20, 12544, %s21_s22, [#allocation3], %s2809_s23, %s2809_s23, %s2810_s24  }
   0x5   :  { %2804 = dma.done.wait [#allocation3], 12544  }
   0x6   :  { %2805 = vsyncadd [#allocation3], 4294954752  ;;  %v54_v0 = vld [vmem:[#allocation2 + $0x78] sm:$0xff]  ;;  %v53_v1 = vld [vmem:[#allocation2 + $0x70] sm:$0xff]  ;;  %vm159_vm0 = vcmask 130048   ;;  %s2811_s8 = smov [#allocation5]  }
   0x7   :  { %v52_v2 = vld [vmem:[#allocation2 + $0x68] sm:$0xff]  ;;  %v2845_v3 = vand.u32 4294901760, %v54_v0  ;;  %v2847_v4 = vand.u32 4294901760, %v53_v1  ;;  %v51_v6 = vld [vmem:[#allocation2 + $0x60] sm:$0xff]  ;;  %v50_v7 = vld [vmem:[#allocation2 + $0x58] sm:$0xff]  ;;  %s2738_s9 = sshll.u32 %s2811_s8, 4  ;;  %s2739_s9 = int_to_ptr.vmem [resolvable:$true] %s2738_s9 }
   0x8   :  { %v2849_v5 = vand.u32 4294901760, %v52_v2  ;;  %v49_v8 = vld [vmem:[#allocation2 + $0x50] sm:$0xff]  ;;  %v2851_v9 = vand.u32 4294901760, %v51_v6  ;;  %v2853_v10 = vand.u32 4294901760, %v50_v7  ;;  %v48_v12 = vld [vmem:[#allocation2 + $0x48] sm:$0xff]  ;;  %v47_v13 = vld [vmem:[#allocation2 + $0x40] sm:$0xff] }
   0x9   :  { %v2855_v11 = vand.u32 4294901760, %v49_v8  ;;  %163 = vmatpush.msra.mxu0 %v2845_v3  ;;  %v2859_v14 = vsub.f32 %v54_v0, %v2845_v3  ;;  %v2862_v15 = vsub.f32 %v53_v1, %v2847_v4  ;;  %359 = vmatpush.msra.mxu3 %v2845_v3  ;;  %v2868_v17 = vand.u32 4294901760, %v48_v12  ;;  %v46_v21 = vld [vmem:[#allocation2 + $0x38] sm:$0xff]  ;;  %v45_v26 = vld [vmem:[#allocation2 + $0x30] sm:$0xff]  ;;  %v44_v36 = vld [vmem:[#allocation2 + $0x28] sm:$0xff]  ;;  %s2740_s12 = sshll.u32 %s4677_s5, 4  ;;  %s2741_s12 = int_to_ptr.hbm [resolvable:$true] %s2740_s12 }
   0xa   :  { %v2866_v16 = vsub.f32 %v52_v2, %v2849_v5  ;;  %v2871_v18 = vsub.f32 %v51_v6, %v2851_v9  ;;  %v2874_v19 = vsub.f32 %v50_v7, %v2853_v10  ;;  %v2884_v25 = vand.u32 4294901760, %v47_v13  ;;  %v43_v42 = vld [vmem:[#allocation2 + $0x20] sm:$0xff]  ;;  %v42_v47 = vld [vmem:[#allocation2 + $0x18] sm:$0xff]  ;;  %v41_v54 = vld [vmem:[#allocation2 + $0x10] sm:$0xff] }
   0xb   :  { %v2877_v20 = vsub.f32 %v49_v8, %v2855_v11  ;;  %165 = vmatpush.msra.mxu0 %v2847_v4  ;;  %306 = vmatpush.msra.mxu2 %v2859_v14  ;;  %v205_v22 = vand.u32 4294901760, %v2859_v14  ;;  %v4693_v23 = vand.u32 4294901760, %v2862_v15  ;;  %v2890_v29 = vsub.f32 %v48_v12, %v2868_v17  ;;  %v37_v55 = vld [vmem:[%s4672_s0] sm:$0xff]  ;;  %v40_v62 = vld [vmem:[#allocation2 + $0x8] sm:$0xff]  ;;  %v39_v6 = vld [vmem:[#allocation2] sm:$0xff] }
   0xc   :  { %v4691_v24 = vand.u32 4294901760, %v2866_v16  ;;  %361 = vmatpush.msra.mxu3 %v2847_v4  ;;  %v4690_v27 = vand.u32 4294901760, %v2871_v18  ;;  %v4687_v28 = vand.u32 4294901760, %v2874_v19  ;;  %v2903_v33 = vand.u32 4294901760, %v46_v21  ;;  %v70_v60 = vld [vmem:[#allocation2 + $0xf8] sm:$0xff]  ;;  %v69_v7 = vld [vmem:[#allocation2 + $0xf0] sm:$0xff] }
   0xd   :  { %167 = vmatpush.msra.mxu0 %v2849_v5  ;;  %309 = vmatpush.msra.mxu2 %v2862_v15  ;;  %v206_v30 = vsub.f32 %v2859_v14, %v205_v22  ;;  %v212_v31 = vsub.f32 %v2862_v15, %v4693_v23  ;;  %v2906_v34 = vand.u32 4294901760, %v45_v26  ;;  %v4685_v35 = vand.u32 4294901760, %v2877_v20  ;;  %143 = vst [vmem:[#allocation1] ss:$4 sm:$0xff] %v37_v55 }
   0xe   :  { %v218_v32 = vsub.f32 %v2866_v16, %v4691_v24  ;;  %363 = vmatpush.msra.mxu3 %v2849_v5  ;;  %v224_v39 = vsub.f32 %v2871_v18, %v4690_v27  ;;  %v2915_v40 = vsub.f32 %v47_v13, %v2884_v25  ;;  %v230_v41 = vsub.f32 %v2874_v19, %v4687_v28 }
   0xf   :  { %169 = vmatpush.msra.mxu0 %v2851_v9  ;;  %v207_v37 = vand.u32 4294901760, %v206_v30  ;;  %312 = vmatpush.msra.mxu2 %v2866_v16  ;;  %v213_v38 = vand.u32 4294901760, %v212_v31  ;;  %v2922_v44 = vand.u32 4294901760, %v44_v36  ;;  %v4684_v45 = vand.u32 4294901760, %v2890_v29 }
  0x10   :  { %365 = vmatpush.msra.mxu3 %v2851_v9  ;;  %v219_v43 = vand.u32 4294901760, %v218_v32  ;;  %v2926_v46 = vsub.f32 %v46_v21, %v2903_v33  ;;  %v236_v48 = vsub.f32 %v2877_v20, %v4685_v35  ;;  %v225_v49 = vand.u32 4294901760, %v224_v39 }
  0x11   :  { %171 = vmatpush.msra.mxu0 %v2853_v10  ;;  %208 = vmatpush.msra.mxu1 %v207_v37  ;;  %v2934_v50 = vand.u32 4294901760, %v43_v42  ;;  %v4683_v51 = vand.u32 4294901760, %v2915_v40  ;;  %v2938_v52 = vsub.f32 %v45_v26, %v2906_v34  ;;  %v2942_v53 = vand.u32 4294901760, %v42_v47 }
  0x12   :  { %315 = vmatpush.msra.mxu2 %v2871_v18  ;;  %367 = vmatpush.msra.mxu3 %v2853_v10  ;;  %v231_v56 = vand.u32 4294901760, %v230_v41  ;;  %v242_v57 = vsub.f32 %v2890_v29, %v4684_v45  ;;  %v4682_v58 = vand.u32 4294901760, %v2926_v46  ;;  %v2953_v59 = vsub.f32 %v44_v36, %v2922_v44  ;;  %v68_v36 = vld [vmem:[#allocation2 + $0xe8] sm:$0xff]  ;;  %v63_v45 = vld [vmem:[#allocation2 + $0xc0] sm:$0xff] }
  0x13   :  { %173 = vmatpush.msra.mxu0 %v2855_v11  ;;  %214 = vmatpush.msra.mxu1 %v213_v38  ;;  %v237_v61 = vand.u32 4294901760, %v236_v48  ;;  %v248_v63 = vsub.f32 %v2915_v40, %v4683_v51  ;;  %v2961_v0 = vand.u32 4294901760, %v41_v54  ;;  %v4681_v1 = vand.u32 4294901760, %v2938_v52 }
  0x14   :  { %318 = vmatpush.msra.mxu2 %v2874_v19  ;;  %369 = vmatpush.msra.mxu3 %v2855_v11  ;;  %v2965_v2 = vsub.f32 %v43_v42, %v2934_v50  ;;  %v2970_v8 = vsub.f32 %v42_v47, %v2942_v53  ;;  %v2972_v12 = vand.u32 4294901760, %v70_v60  ;;  %v243_v13 = vand.u32 4294901760, %v242_v57  ;;  %v67_v47 = vld [vmem:[#allocation2 + $0xe0] sm:$0xff] }
  0x15   :  { %175 = vmatpush.msra.mxu0 %v2868_v17  ;;  %220 = vmatpush.msra.mxu1 %v219_v43  ;;  %v254_v21 = vsub.f32 %v2926_v46, %v4682_v58  ;;  %v2978_v26 = vand.u32 4294901760, %v40_v62  ;;  %v4679_v30 = vand.u32 4294901760, %v2953_v59  ;;  %v2983_v31 = vand.u32 4294901760, %v39_v6  ;;  %v64_v58 = vld [vmem:[#allocation2 + $0xc8] sm:$0xff] }
  0x16   :  { %321 = vmatpush.msra.mxu2 %v2877_v20  ;;  %371 = vmatpush.msra.mxu3 %v2868_v17  ;;  %v2985_v32 = vand.u32 4294901760, %v69_v7  ;;  %v249_v37 = vand.u32 4294901760, %v248_v63  ;;  %v260_v38 = vsub.f32 %v2938_v52, %v4681_v1  ;;  %v4678_v39 = vand.u32 4294901760, %v2965_v2 }
  0x17   :  { %177 = vmatpush.msra.mxu0 %v2884_v25  ;;  %226 = vmatpush.msra.mxu1 %v225_v49  ;;  %4736 = vst [vmem:[#allocation8_spill] sm:$0xff] %v2983_v31  ;;  %v2993_v41 = vsub.f32 %v41_v54, %v2961_v0  ;;  %v4680_v42 = vand.u32 4294901760, %v2970_v8  ;;  %v2999_v43 = vsub.f32 %v70_v60, %v2972_v12  ;;  %v255_v48 = vand.u32 4294901760, %v254_v21  ;;  %v66_v60 = vld [vmem:[#allocation2 + $0xd8] sm:$0xff]  ;;  %v65_v21 = vld [vmem:[#allocation2 + $0xd0] sm:$0xff] }
  0x18   :  { %324 = vmatpush.msra.mxu2 %v2890_v29  ;;  %373 = vmatpush.msra.mxu3 %v2884_v25  ;;  %v266_v49 = vsub.f32 %v2953_v59, %v4679_v30  ;;  %v3006_v54 = vsub.f32 %v40_v62, %v2978_v26  ;;  %v3008_v55 = vand.u32 4294901760, %v68_v36  ;;  %v3016_v57 = vsub.f32 %v69_v7, %v2985_v32 }
  0x19   :  { %179 = vmatpush.msra.mxu0 %v2903_v33  ;;  %232 = vmatpush.msra.mxu1 %v231_v56  ;;  %v3013_v56 = vsub.f32 %v39_v6, %v2983_v31  ;;  %v272_v62 = vsub.f32 %v2965_v2, %v4678_v39  ;;  %v4686_v63 = vand.u32 4294901760, %v2993_v41  ;;  %v278_v6 = vsub.f32 %v2970_v8, %v4680_v42 }
  0x1a   :  { %327 = vmatpush.msra.mxu2 %v2915_v40  ;;  %375 = vmatpush.msra.mxu3 %v2903_v33  ;;  %v4688_v7 = vand.u32 4294901760, %v2999_v43  ;;  %v3034_v39 = vsub.f32 %v68_v36, %v3008_v55  ;;  %v3036_v30 = vand.u32 4294901760, %v66_v60  ;;  %v4692_v1 = vand.u32 4294901760, %v3016_v57 }
  0x1b   :  { %181 = vmatpush.msra.mxu0 %v2906_v34  ;;  %238 = vmatpush.msra.mxu1 %v237_v61  ;;  %v261_v61 = vand.u32 4294901760, %v260_v38  ;;  %v4689_v38 = vand.u32 4294901760, %v3006_v54  ;;  %v4694_v42 = vand.u32 4294901760, %v3013_v56  ;;  %v284_v36 = vsub.f32 %v2993_v41, %v4686_v63 }
  0x1c   :  { %330 = vmatpush.msra.mxu2 %v2926_v46  ;;  %377 = vmatpush.msra.mxu3 %v2906_v34  ;;  %v3049_v51 = vand.u32 4294901760, %v65_v21  ;;  %v279_v35 = vand.u32 4294901760, %v278_v6  ;;  %v3062_v63 = vsub.f32 %v66_v60, %v3036_v30  ;;  %v3064_v28 = vand.u32 4294901760, %v64_v58  ;;  %v62_v6 = vld [vmem:[#allocation2 + $0xb8] sm:$0xff] }
  0x1d   :  { %183 = vmatpush.msra.mxu0 %v2922_v44  ;;  %244 = vmatpush.msra.mxu1 %v243_v13  ;;  %v3023_v13 = vand.u32 4294901760, %v67_v47  ;;  %v296_v60 = vsub.f32 %v3013_v56, %v4694_v42  ;;  %v3084_v23 = vand.u32 4294901760, %v62_v6  ;;  %v4738_v14 = vand.u32 4294901760, %v2862_v15 }
  0x1e   :  { %333 = vmatpush.msra.mxu2 %v2938_v52  ;;  %379 = vmatpush.msra.mxu3 %v2922_v44  ;;  %v3079_v24 = vsub.f32 %v65_v21, %v3049_v51  ;;  %v3092_v27 = vsub.f32 %v64_v58, %v3064_v28  ;;  %v4740_v15 = vand.u32 4294901760, %v2866_v16  ;;  %v4742_v16 = vand.u32 4294901760, %v2871_v18 }
  0x1f   :  { %185 = vmatpush.msra.mxu0 %v2934_v50  ;;  %250 = vmatpush.msra.mxu1 %v249_v37  ;;  %v267_v37 = vand.u32 4294901760, %v266_v49  ;;  %v3047_v49 = vsub.f32 %v67_v47, %v3023_v13  ;;  %v290_v47 = vsub.f32 %v3006_v54, %v4689_v38  ;;  %v285_v38 = vand.u32 4294901760, %v284_v36 }
  0x20   :  { %336 = vmatpush.msra.mxu2 %v2953_v59  ;;  %381 = vmatpush.msra.mxu3 %v2934_v50  ;;  %v4737_v36 = vand.u32 4294901760, %v3034_v39  ;;  %v4744_v18 = vand.u32 4294901760, %v2874_v19  ;;  %v4746_v19 = vand.u32 4294901760, %v2877_v20  ;;  %v4748_v20 = vand.u32 4294901760, %v2890_v29 }
  0x21   :  { %187 = vmatpush.msra.mxu0 %v2942_v53  ;;  %256 = vmatpush.msra.mxu1 %v255_v48  ;;  %v273_v48 = vand.u32 4294901760, %v272_v62  ;;  %v61_v62 = vld [vmem:[#allocation2 + $0xb0] sm:$0xff]  ;;  %v4750_v29 = vand.u32 4294901760, %v2915_v40  ;;  %v4752_v40 = vand.u32 4294901760, %v2926_v46  ;;  %v4754_v46 = vand.u32 4294901760, %v2938_v52 }
  0x22   :  { %339 = vmatpush.msra.mxu2 %v2965_v2  ;;  %383 = vmatpush.msra.mxu3 %v2942_v53  ;;  %v559_v42 = vsub.f32 %v3034_v39, %v4737_v36  ;;  %v4739_v36 = vand.u32 4294901760, %v3047_v49  ;;  %vm2731_vm2 = vcmask 74752  }
  0x23   :  { %189 = vmatpush.msra.mxu0 %v2961_v0  ;;  %262 = vmatpush.msra.mxu1 %v261_v61  ;;  %v547_v61 = vsub.f32 %v2999_v43, %v4688_v7  ;;  %v3071_v7 = vand.u32 4294901760, %v63_v45 }
  0x24   :  { %342 = vmatpush.msra.mxu2 %v2970_v8  ;;  %385 = vmatpush.msra.mxu3 %v2961_v0  ;;  %v565_v21 = vsub.f32 %v3047_v49, %v4739_v36 }
  0x25   :  { %191 = vmatpush.msra.mxu0 %v2978_v26  ;;  %268 = vmatpush.msra.mxu1 %v267_v37  ;;  %v553_v37 = vsub.f32 %v3016_v57, %v4692_v1  ;;  %v548_v1 = vand.u32 4294901760, %v547_v61  ;;  %v60_v61 = vld [vmem:[#allocation2 + $0xa8] sm:$0xff] }
  0x26   :  { %345 = vmatpush.msra.mxu2 %v2993_v41  ;;  %387 = vmatpush.msra.mxu3 %v2978_v26  ;;  %v3117_v58 = vand.u32 4294901760, %v60_v61 }
  0x27   :  { %193 = vmatpush.msra.mxu0 %v2983_v31  ;;  %274 = vmatpush.msra.mxu1 %v273_v48  ;;  %v291_v48 = vand.u32 4294901760, %v290_v47  ;;  %v297_v47 = vand.u32 4294901760, %v296_v60  ;;  %v4741_v60 = vand.u32 4294901760, %v3062_v63 }
  0x28   :  { %348 = vmatpush.msra.mxu2 %v3006_v54  ;;  %389 = vmatpush.msra.mxu3 %v2983_v31  ;;  %v3105_v31 = vand.u32 4294901760, %v61_v62 }
  0x29   :  { %400 = vmatpush.msrb.mxu0 %v205_v22  ;;  %280 = vmatpush.msra.mxu1 %v279_v35  ;;  %v554_v22 = vand.u32 4294901760, %v553_v37  ;;  %v3098_v35 = vsub.f32 %v63_v45, %v3071_v7  ;;  %v3110_v45 = vsub.f32 %v62_v6, %v3084_v23  ;;  %v59_v37 = vld [vmem:[#allocation2 + $0xa0] sm:$0xff]  ;;  %v58_v6 = vld [vmem:[#allocation2 + $0x98] sm:$0xff] }
  0x2a   :  { %351 = vmatpush.msra.mxu2 %v3013_v56  ;;  %549 = vmatpush.msrb.mxu3 %v548_v1  ;;  %v3129_v36 = vand.u32 4294901760, %v59_v37  ;;  %v3142_v1 = vand.u32 4294901760, %v58_v6 }
  0x2b   :  { %404 = vmatpush.msrb.mxu0 %v4738_v14  ;;  %286 = vmatpush.msra.mxu1 %v285_v38  ;;  %v560_v38 = vand.u32 4294901760, %v559_v42  ;;  %v571_v14 = vsub.f32 %v3062_v63, %v4741_v60  ;;  %v4743_v42 = vand.u32 4294901760, %v3079_v24  ;;  %v3127_v60 = vsub.f32 %v61_v62, %v3105_v31 }
  0x2c   :  { %504 = vmatpush.msrb.mxu2 %v2972_v12  ;;  %555 = vmatpush.msrb.mxu3 %v554_v22  ;;  %v3140_v62 = vsub.f32 %v60_v61, %v3117_v58  ;;  %v3153_v61 = vsub.f32 %v59_v37, %v3129_v36 }
  0x2d   :  { %408 = vmatpush.msrb.mxu0 %v4740_v15  ;;  %292 = vmatpush.msra.mxu1 %v291_v48  ;;  %v566_v48 = vand.u32 4294901760, %v565_v21  ;;  %v577_v15 = vsub.f32 %v3079_v24, %v4743_v42  ;;  %v572_v21 = vand.u32 4294901760, %v571_v14 }
  0x2e   :  { %506 = vmatpush.msrb.mxu2 %v2985_v32  ;;  %561 = vmatpush.msrb.mxu3 %v560_v38  ;;  %v57_v38 = vld [vmem:[#allocation2 + $0x90] sm:$0xff] }
  0x2f   :  { %412 = vmatpush.msrb.mxu0 %v4742_v16  ;;  %298 = vmatpush.msra.mxu1 %v297_v47  ;;  %v146_v47 = vld.sshfl [vmem:[#allocation1] sm:$0xff pattern:$0x73625140]  ;;  %v4745_v16 = vand.u32 4294901760, %v3092_v27  ;;  %v578_v14 = vand.u32 4294901760, %v577_v15  ;;  %v3165_v37 = vand.u32 4294901760, %v57_v38 }
  0x30   :  { %508 = vmatpush.msrb.mxu2 %v3008_v55  ;;  %567 = vmatpush.msrb.mxu3 %v566_v48  ;;  %v3155_v22 = vand.u32 4294901760, %v146_v47 }
  0x31   :  { %416 = vmatpush.msrb.mxu0 %v4744_v18  ;;  %467 = vmatpush.msrb.mxu1 %v2845_v3  ;;  %v583_v42 = vsub.f32 %v3092_v27, %v4745_v16  ;;  %v4747_v3 = vand.u32 4294901760, %v3098_v35  ;;  %v3168_v16 = vsub.f32 %v58_v6, %v3142_v1 }
  0x32   :  { %510 = vmatpush.msrb.mxu2 %v3023_v13  ;;  %573 = vmatpush.msrb.mxu3 %v572_v21  ;;  %v4751_v21 = vand.u32 4294901760, %v3127_v60  ;;  %v3179_v15 = vsub.f32 %v146_v47, %v3155_v22  ;;  %v3192_v47 = vsub.f32 %v57_v38, %v3165_v37 }
  0x33   :  { %420 = vmatpush.msrb.mxu0 %v4746_v19  ;;  %469 = vmatpush.msrb.mxu1 %v2847_v4  ;;  %v589_v18 = vsub.f32 %v3098_v35, %v4747_v3  ;;  %v4749_v4 = vand.u32 4294901760, %v3110_v45  ;;  %v56_v3 = vld [vmem:[#allocation2 + $0x88] sm:$0xff]  ;;  %v584_v48 = vand.u32 4294901760, %v583_v42 }
  0x34   :  { %512 = vmatpush.msrb.mxu2 %v3036_v30  ;;  %579 = vmatpush.msrb.mxu3 %v578_v14  ;;  %v601_v42 = vsub.f32 %v3127_v60, %v4751_v21  ;;  %v3181_v6 = vand.u32 4294901760, %v56_v3 }
  0x35   :  { %424 = vmatpush.msrb.mxu0 %v4748_v20  ;;  %471 = vmatpush.msrb.mxu1 %v2849_v5  ;;  %v595_v19 = vsub.f32 %v3110_v45, %v4749_v4  ;;  %v590_v5 = vand.u32 4294901760, %v589_v18  ;;  %v55_v20 = vld [vmem:[#allocation2 + $0x80] sm:$0xff]  ;;  %v612_v4 = vand.u32 4294901760, %v3153_v61  ;;  %v4753_v18 = vand.u32 4294901760, %v3140_v62 }
  0x36   :  { %514 = vmatpush.msrb.mxu2 %v3049_v51  ;;  %585 = vmatpush.msrb.mxu3 %v584_v48  ;;  %v3194_v21 = vand.u32 4294901760, %v55_v20  ;;  %v196_v48 = vand.u32 4294901760, %v3179_v15  ;;  %v3205_v38 = vsub.f32 %v56_v3, %v3181_v6  ;;  %v4756_v3 = vand.u32 4294901760, %v2965_v2 }
  0x37   :  { %428 = vmatpush.msrb.mxu0 %v4750_v29  ;;  %473 = vmatpush.msrb.mxu1 %v2851_v9  ;;  %v596_v9 = vand.u32 4294901760, %v595_v19  ;;  %v607_v14 = vsub.f32 %v3140_v62, %v4753_v18  ;;  %v618_v29 = vand.u32 4294901760, %v3168_v16  ;;  %v613_v19 = vsub.f32 %v3153_v61, %v612_v4 }
  0x38   :  { %516 = vmatpush.msrb.mxu2 %v3064_v28  ;;  %591 = vmatpush.msrb.mxu3 %v590_v5  ;;  %v624_v5 = vand.u32 4294901760, %v3192_v47  ;;  %v630_v18 = vand.u32 4294901760, %v3205_v38 }
  0x39   :  { %432 = vmatpush.msrb.mxu0 %v4752_v40  ;;  %475 = vmatpush.msrb.mxu1 %v2853_v10  ;;  %v602_v10 = vand.u32 4294901760, %v601_v42  ;;  %v4755_v40 = vand.u32 4294901760, %v2953_v59  ;;  %v619_v52 = vsub.f32 %v3168_v16, %v618_v29  ;;  %v3216_v42 = vsub.f32 %v55_v20, %v3194_v21  ;;  %v147_v59 = vld.sshfl [vmem:[#allocation1 + $0x8] sm:$0xff pattern:$0x73625140] }
  0x3a   :  { %518 = vmatpush.msrb.mxu2 %v3071_v7  ;;  %597 = vmatpush.msrb.mxu3 %v596_v9  ;;  %v197_v9 = vsub.f32 %v3179_v15, %v196_v48 }
  0x3b   :  { %436 = vmatpush.msrb.mxu0 %v4754_v46  ;;  %477 = vmatpush.msrb.mxu1 %v2855_v11  ;;  %v608_v11 = vand.u32 4294901760, %v607_v14  ;;  %v4757_v14 = vand.u32 4294901760, %v2970_v8  ;;  %v620_v2 = vand.u32 4294901760, %v619_v52  ;;  %v636_v20 = vand.u32 4294901760, %v3216_v42 }
  0x3c   :  { %520 = vmatpush.msrb.mxu2 %v3084_v23  ;;  %603 = vmatpush.msrb.mxu3 %v602_v10  ;;  %v3232_v46 = vand.u32 4294901760, %v147_v59  ;;  %v4758_v10 = vand.u32 4294901760, %v2993_v41  ;;  %v631_v8 = vsub.f32 %v3205_v38, %v630_v18 }
  0x3d   :  { %440 = vmatpush.msrb.mxu0 %v4755_v40  ;;  %479 = vmatpush.msrb.mxu1 %v2868_v17  ;;  %v614_v17 = vand.u32 4294901760, %v613_v19  ;;  %v4759_v19 = vand.u32 4294901760, %v3006_v54 }
  0x3e   :  { %522 = vmatpush.msrb.mxu2 %v3105_v31  ;;  %609 = vmatpush.msrb.mxu3 %v608_v11  ;;  %v3249_v40 = vsub.f32 %v147_v59, %v3232_v46  ;;  %v4760_v11 = vand.u32 4294901760, %v3013_v56  ;;  %v4763_v56 = vld [vmem:[#allocation8_spill] sm:$0xff] }
  0x3f   :  { %444 = vmatpush.msrb.mxu0 %v4756_v3  ;;  %481 = vmatpush.msrb.mxu1 %v2884_v25  ;;  %v625_v25 = vsub.f32 %v3192_v47, %v624_v5 }
  0x40   :  { %524 = vmatpush.msrb.mxu2 %v3117_v58  ;;  %615 = vmatpush.msrb.mxu3 %v614_v17  ;;  %v537_v52 = vand.u32 4294901760, %v3249_v40 }
  0x41   :  { %448 = vmatpush.msrb.mxu0 %v4757_v14  ;;  %483 = vmatpush.msrb.mxu1 %v2903_v33  ;;  %v198_v33 = vand.u32 4294901760, %v197_v9  ;;  %v626_v41 = vand.u32 4294901760, %v625_v25  ;;  %v77_v9 = vld [vmem:[#allocation2 + $0x130] sm:$0xff] }
  0x42   :  { %526 = vmatpush.msrb.mxu2 %v3129_v36  ;;  %621 = vmatpush.msrb.mxu3 %v620_v2 }
  0x43   :  { %452 = vmatpush.msrb.mxu0 %v4758_v10  ;;  %485 = vmatpush.msrb.mxu1 %v2906_v34  ;;  %v637_v34 = vsub.f32 %v3216_v42, %v636_v20 }
  0x44   :  { %528 = vmatpush.msrb.mxu2 %v3142_v1  ;;  %199 = vmatmul.f32.vlgmr.msra.gmra.mxu0 %v198_v33  ;;  %v3417_v33 = vand.u32 4294901760, %v77_v9 }
  0x45   :  { %456 = vmatpush.msrb.mxu0 %v4759_v19  ;;  %487 = vmatpush.msrb.mxu1 %v2922_v44  ;;  %v632_v44 = vand.u32 4294901760, %v631_v8  ;;  %v638_v54 = vand.u32 4294901760, %v637_v34  ;;  %v75_v19 = vld [vmem:[#allocation2 + $0x120] sm:$0xff] }
  0x46   :  { %530 = vmatpush.msrb.mxu2 %v3165_v37  ;;  %627 = vmatpush.msrb.mxu3 %v626_v41 }
  0x47   :  { %460 = vmatpush.msrb.mxu0 %v4760_v11  ;;  %489 = vmatpush.msrb.mxu1 %v2934_v50  ;;  %v4761_v50 = vand.u32 4294901760, %v2999_v43 }
  0x48   :  { %532 = vmatpush.msrb.mxu2 %v3181_v6  ;;  %633 = vmatpush.msrb.mxu3 %v632_v44 }
  0x49   :  { %647 = vmatpush.msra.mxu0 %v2999_v43  ;;  %491 = vmatpush.msrb.mxu1 %v2942_v53  ;;  %v538_v53 = vsub.f32 %v3249_v40, %v537_v52 }
  0x4a   :  { %534 = vmatpush.msrb.mxu2 %v3194_v21  ;;  %639 = vmatpush.msrb.mxu3 %v638_v54 }
  0x4b   :  { %650 = vmatpush.msra.mxu0 %v3016_v57  ;;  %493 = vmatpush.msrb.mxu1 %v2961_v0  ;;  %v4762_v0 = vand.u32 4294901760, %v3016_v57  ;;  %v539_v43 = vand.u32 4294901760, %v538_v53  ;;  %v4765_v57 = vand.u32 4294901760, %v3047_v49  ;;  %v3441_v53 = vand.u32 4294901760, %v75_v19 }
  0x4c   :  { %354 = vmatmul.f32.vlgmr.msra.gmra.mxu2 %v3179_v15  ;;  %393 = vmatmul.f32.vlgmr.msra.gmra.mxu3 %v196_v48  ;;  %v80_v15 = vld [vmem:[#allocation2 + $0x148] sm:$0xff] }
  0x4d   :  { %653 = vmatpush.msra.mxu0 %v3034_v39  ;;  %741 = vmatpush.msra.mxu2 %v4761_v50  ;;  %v3380_v48 = vand.u32 4294901760, %v80_v15 }
  0x4e   :  { %495 = vmatpush.msrb.mxu1 %v2978_v26  ;;  %808 = vmatpush.msra.mxu3 %v2972_v12  ;;  %v4764_v26 = vand.u32 4294901760, %v3034_v39  ;;  %v4766_v39 = vand.u32 4294901760, %v3062_v63 }
  0x4f   :  { %656 = vmatpush.msra.mxu0 %v3047_v49  ;;  %745 = vmatpush.msra.mxu2 %v4762_v0  ;;  %v3407_v25 = vsub.f32 %v80_v15, %v3380_v48 }
  0x50   :  { %497 = vmatpush.msrb.mxu1 %v4763_v56  ;;  %810 = vmatpush.msra.mxu3 %v2985_v32  ;;  %v3445_v56 = vsub.f32 %v77_v9, %v3417_v33 }
  0x51   :  { %659 = vmatpush.msra.mxu0 %v3062_v63  ;;  %300 = vmatmul.f32.vlgmr.msra.gmra.mxu1 %v3155_v22  ;;  %v4702_v11 = vand.u32 4294901760, %v3407_v25 }
  0x52   :  { %749 = vmatpush.msra.mxu2 %v4764_v26  ;;  %700 = vmatpush.msra.mxu1 %v2972_v12  ;;  %v4767_v12 = vand.u32 4294901760, %v3079_v24 }
  0x53   :  { %662 = vmatpush.msra.mxu0 %v3079_v24  ;;  %812 = vmatpush.msra.mxu3 %v3008_v55  ;;  %v4769_v24 = vand.u32 4294901760, %v3098_v35 }
  0x54   :  { %753 = vmatpush.msra.mxu2 %v4765_v57  ;;  %702 = vmatpush.msra.mxu1 %v2985_v32  ;;  %v4768_v32 = vand.u32 4294901760, %v3092_v27 }
  0x55   :  { %540 = vmatmul.f32.vlgmr.msrb.gmra.mxu2 %v539_v43  ;;  %665 = vmatpush.msra.mxu0 %v3092_v27  ;;  %v85_v27 = vld [vmem:[#allocation2 + $0x170] sm:$0xff] }
  0x56   :  { %704 = vmatpush.msra.mxu1 %v3008_v55  ;;  %757 = vmatpush.msra.mxu2 %v4766_v39  ;;  %v86_v55 = vld [vmem:[#allocation2 + $0x178] sm:$0xff]  ;;  %v3325_v49 = vand.u32 4294901760, %v85_v27  ;;  %v73_v43 = vld [vmem:[#allocation2 + $0x110] sm:$0xff]  ;;  %v924_v39 = vsub.f32 %v3407_v25, %v4702_v11 }
  0x57   :  { %814 = vmatpush.msra.mxu3 %v3023_v13  ;;  %462 = vmatmul.f32.vlgmr.msrb.gmra.mxu0 %v3155_v22  ;;  %v3318_v63 = vand.u32 4294901760, %v86_v55 }
  0x58   :  { %641 = vmatmul.f32.vlgmr.msrb.gmra.mxu3 %v3232_v46  ;;  %668 = vmatpush.msra.mxu0 %v3098_v35 }
  0x59   :  { %706 = vmatpush.msra.mxu1 %v3023_v13  ;;  %761 = vmatpush.msra.mxu2 %v4767_v12  ;;  %v4772_v13 = vand.u32 4294901760, %v3140_v62 }
  0x5a   :  { %816 = vmatpush.msra.mxu3 %v3036_v30  ;;  %499 = vmatmul.f32.vlgmr.msrb.gmra.mxu1 %v3155_v22  ;;  %v81_v22 = vld [vmem:[#allocation2 + $0x150] sm:$0xff] }
  0x5b   :  { %671 = vmatpush.msra.mxu0 %v3110_v45  ;;  %708 = vmatpush.msra.mxu1 %v3036_v30  ;;  %v4770_v30 = vand.u32 4294901760, %v3110_v45  ;;  %v82_v45 = vld [vmem:[#allocation2 + $0x158] sm:$0xff] }
  0x5c   :  { %765 = vmatpush.msra.mxu2 %v4768_v32  ;;  %818 = vmatpush.msra.mxu3 %v3049_v51 }
  0x5d   :  { %674 = vmatpush.msra.mxu0 %v3127_v60  ;;  %710 = vmatpush.msra.mxu1 %v3049_v51  ;;  %v4771_v51 = vand.u32 4294901760, %v3127_v60  ;;  %v3345_v60 = vsub.f32 %v85_v27, %v3325_v49  ;;  %v3467_v27 = vand.u32 4294901760, %v73_v43 }
  0x5e   :  { %769 = vmatpush.msra.mxu2 %v4769_v24  ;;  %820 = vmatpush.msra.mxu3 %v3064_v28 }
  0x5f   :  { %677 = vmatpush.msra.mxu0 %v3140_v62  ;;  %712 = vmatpush.msra.mxu1 %v3064_v28  ;;  %v84_v28 = vld [vmem:[#allocation2 + $0x168] sm:$0xff]  ;;  %v3349_v62 = vand.u32 4294901760, %v82_v45 }
  0x60   :  { %773 = vmatpush.msra.mxu2 %v4770_v30  ;;  %822 = vmatpush.msra.mxu3 %v3071_v7  ;;  %v3332_v35 = vand.u32 4294901760, %v84_v28 }
  0x61   :  { %680 = vmatpush.msra.mxu0 %v3153_v61  ;;  %714 = vmatpush.msra.mxu1 %v3071_v7  ;;  %v83_v7 = vld [vmem:[#allocation2 + $0x160] sm:$0xff]  ;;  %v3360_v61 = vand.u32 4294901760, %v81_v22 }
  0x62   :  { %777 = vmatpush.msra.mxu2 %v4771_v51  ;;  %824 = vmatpush.msra.mxu3 %v3084_v23  ;;  %v4699_v51 = vand.u32 4294901760, %v3445_v56 }
  0x63   :  { %683 = vmatpush.msra.mxu0 %v3168_v16  ;;  %716 = vmatpush.msra.mxu1 %v3084_v23  ;;  %v3335_v23 = vsub.f32 %v86_v55, %v3318_v63  ;;  %v3356_v16 = vsub.f32 %v84_v28, %v3332_v35  ;;  %v3471_v28 = vsub.f32 %v75_v19, %v3441_v53 }
  0x64   :  { %781 = vmatpush.msra.mxu2 %v4772_v13  ;;  %826 = vmatpush.msra.mxu3 %v3105_v31  ;;  %v72_v13 = vld [vmem:[#allocation2 + $0x108] sm:$0xff] }
  0x65   :  { %686 = vmatpush.msra.mxu0 %v3192_v47  ;;  %718 = vmatpush.msra.mxu1 %v3105_v31  ;;  %v3342_v31 = vand.u32 4294901760, %v83_v7 }
  0x66   :  { %785 = vmatpush.msra.mxu2 %v612_v4  ;;  %828 = vmatpush.msra.mxu3 %v3117_v58 }
  0x67   :  { %689 = vmatpush.msra.mxu0 %v3205_v38  ;;  %720 = vmatpush.msra.mxu1 %v3117_v58  ;;  %v887_v58 = vand.u32 4294901760, %v3335_v23  ;;  %v3367_v4 = vsub.f32 %v83_v7, %v3342_v31  ;;  %v899_v38 = vand.u32 4294901760, %v3356_v16 }
  0x68   :  { %789 = vmatpush.msra.mxu2 %v618_v29  ;;  %830 = vmatpush.msra.mxu3 %v3129_v36  ;;  %v3372_v29 = vsub.f32 %v82_v45, %v3349_v62  ;;  %v925_v45 = vand.u32 4294901760, %v924_v39 }
  0x69   :  { %692 = vmatpush.msra.mxu0 %v3216_v42  ;;  %722 = vmatpush.msra.mxu1 %v3129_v36  ;;  %v893_v36 = vand.u32 4294901760, %v3345_v60  ;;  %v888_v47 = vsub.f32 %v3335_v23, %v887_v58  ;;  %v4708_v59 = vand.u32 4294901760, %v3367_v4  ;;  %v900_v14 = vsub.f32 %v3356_v16, %v899_v38 }
  0x6a   :  { %793 = vmatpush.msra.mxu2 %v624_v5  ;;  %832 = vmatpush.msra.mxu3 %v3142_v1  ;;  %v78_v5 = vld [vmem:[#allocation2 + $0x138] sm:$0xff]  ;;  %v4705_v17 = vand.u32 4294901760, %v3372_v29 }
  0x6b   :  { %695 = vmatmul.f32.vlgmr.msra.gmra.mxu0 %v3249_v40  ;;  %724 = vmatpush.msra.mxu1 %v3142_v1  ;;  %v79_v1 = vld [vmem:[#allocation2 + $0x140] sm:$0xff]  ;;  %v894_v42 = vsub.f32 %v3345_v60, %v893_v36  ;;  %v3404_v2 = vand.u32 4294901760, %v78_v5  ;;  %v906_v10 = vsub.f32 %v3367_v4, %v4708_v59  ;;  %v901_v41 = vand.u32 4294901760, %v900_v14  ;;  %v148_v40 = vld.sshfl [vmem:[#allocation1 + $0x10] sm:$0xff pattern:$0x73625140] }
  0x6c   :  { %845 = vmatpush.msrb.mxu0 %v3318_v63  ;;  %797 = vmatpush.msra.mxu2 %v630_v18  ;;  %v3393_v3 = vand.u32 4294901760, %v79_v1  ;;  %v889_v18 = vand.u32 4294901760, %v888_v47  ;;  %v3449_v57 = vand.u32 4294901760, %v148_v40  ;;  %v102_v47 = vld [vmem:[#allocation2 + $0x1f8] sm:$0xff]  ;;  %v4696_v14 = vand.u32 4294901760, %v3471_v28 }
  0x6d   :  { %834 = vmatpush.msra.mxu3 %v3165_v37  ;;  %726 = vmatpush.msra.mxu1 %v3165_v37  ;;  %v3386_v37 = vsub.f32 %v81_v22, %v3360_v61  ;;  %v3433_v44 = vsub.f32 %v78_v5, %v3404_v2  ;;  %v907_v50 = vand.u32 4294901760, %v906_v10  ;;  %v3488_v5 = vand.u32 4294901760, %v72_v13  ;;  %v94_v59 = vld [vmem:[#allocation2 + $0x1b8] sm:$0xff] }
  0x6e   :  { %847 = vmatpush.msrb.mxu0 %v3325_v49  ;;  %801 = vmatpush.msra.mxu2 %v636_v20  ;;  %v76_v20 = vld [vmem:[#allocation2 + $0x128] sm:$0xff]  ;;  %v3420_v8 = vsub.f32 %v79_v1, %v3393_v3  ;;  %v3476_v7 = vsub.f32 %v148_v40, %v3449_v57  ;;  %v3501_v10 = vand.u32 4294901760, %v102_v47 }
  0x6f   :  { %836 = vmatpush.msra.mxu3 %v3181_v6  ;;  %803 = vmatmul.f32.vlgmr.msra.gmra.mxu2 %v3232_v46  ;;  %v3429_v34 = vand.u32 4294901760, %v76_v20  ;;  %v4700_v32 = vand.u32 4294901760, %v3433_v44 }
  0x70   :  { %849 = vmatpush.msrb.mxu0 %v3332_v35  ;;  %988 = vmatpush.msrb.mxu2 %v3335_v23  ;;  %v4701_v0 = vand.u32 4294901760, %v3420_v8 }
  0x71   :  { %728 = vmatpush.msra.mxu1 %v3181_v6  ;;  %838 = vmatpush.msra.mxu3 %v3194_v21  ;;  %v4704_v6 = vand.u32 4294901760, %v3386_v37  ;;  %v3459_v24 = vsub.f32 %v76_v20, %v3429_v34  ;;  %v936_v22 = vsub.f32 %v3433_v44, %v4700_v32  ;;  %v3496_v20 = vsub.f32 %v73_v43, %v3467_v27 }
  0x72   :  { %840 = vmatmul.f32.vlgmr.msra.gmra.mxu3 %v3232_v46  ;;  %851 = vmatpush.msrb.mxu0 %v3342_v31  ;;  %v895_v46 = vand.u32 4294901760, %v894_v42  ;;  %v930_v30 = vsub.f32 %v3420_v8, %v4701_v0  ;;  %v71_v42 = vld [vmem:[#allocation2 + $0x100] sm:$0xff]  ;;  %v954_v43 = vsub.f32 %v3471_v28, %v4696_v14 }
  0x73   :  { %991 = vmatpush.msrb.mxu2 %v3345_v60  ;;  %1041 = vmatpush.msrb.mxu3 %v3318_v63  ;;  %v918_v54 = vsub.f32 %v3386_v37, %v4704_v6  ;;  %v4697_v15 = vand.u32 4294901760, %v3459_v24  ;;  %v937_v19 = vand.u32 4294901760, %v936_v22  ;;  %v3507_v40 = vand.u32 4294901760, %v71_v42 }
  0x74   :  { %730 = vmatpush.msra.mxu1 %v3194_v21  ;;  %853 = vmatpush.msrb.mxu0 %v3349_v62  ;;  %v912_v21 = vsub.f32 %v3372_v29, %v4705_v17  ;;  %v931_v9 = vand.u32 4294901760, %v930_v30  ;;  %v4703_v39 = vand.u32 4294901760, %v3496_v20  ;;  %v99_v30 = vld [vmem:[#allocation2 + $0x1e0] sm:$0xff] }
  0x75   :  { %734 = vmatmul.f32.vlgmr.msra.gmra.mxu1 %v537_v52  ;;  %994 = vmatpush.msrb.mxu2 %v3356_v16  ;;  %v74_v52 = vld [vmem:[#allocation2 + $0x118] sm:$0xff]  ;;  %v919_v55 = vand.u32 4294901760, %v918_v54 }
  0x76   :  { %890 = vmatpush.msrb.mxu1 %v889_v18  ;;  %1043 = vmatpush.msrb.mxu3 %v3325_v49  ;;  %v913_v26 = vand.u32 4294901760, %v912_v21  ;;  %v3455_v12 = vand.u32 4294901760, %v74_v52  ;;  %v942_v18 = vsub.f32 %v3445_v56, %v4699_v51  ;;  %v101_v21 = vld [vmem:[#allocation2 + $0x1f0] sm:$0xff] }
  0x77   :  { %855 = vmatpush.msrb.mxu0 %v3360_v61  ;;  %997 = vmatpush.msrb.mxu2 %v3367_v4 }
  0x78   :  { %896 = vmatpush.msrb.mxu1 %v895_v46  ;;  %1045 = vmatpush.msrb.mxu3 %v3332_v35  ;;  %v3484_v1 = vsub.f32 %v74_v52, %v3455_v12  ;;  %v4710_v46 = vand.u32 4294901760, %v3476_v7  ;;  %v3513_v52 = vsub.f32 %v72_v13, %v3488_v5 }
  0x79   :  { %857 = vmatpush.msrb.mxu0 %v3380_v48  ;;  %1000 = vmatpush.msrb.mxu2 %v3372_v29 }
  0x7a   :  { %902 = vmatpush.msrb.mxu1 %v901_v41  ;;  %1047 = vmatpush.msrb.mxu3 %v3342_v31  ;;  %v948_v41 = vsub.f32 %v3459_v24, %v4697_v15  ;;  %v4698_v54 = vand.u32 4294901760, %v3484_v1  ;;  %v879_v13 = vsub.f32 %v3476_v7, %v4710_v46  ;;  %v98_v15 = vld [vmem:[#allocation2 + $0x1d8] sm:$0xff]  ;;  %v93_v46 = vld [vmem:[#allocation2 + $0x1b0] sm:$0xff] }
  0x7b   :  { %859 = vmatpush.msrb.mxu0 %v3393_v3  ;;  %1003 = vmatpush.msrb.mxu2 %v3386_v37  ;;  %v3554_v0 = vand.u32 4294901760, %v98_v15 }
  0x7c   :  { %908 = vmatpush.msrb.mxu1 %v907_v50  ;;  %1049 = vmatpush.msrb.mxu3 %v3349_v62  ;;  %v100_v50 = vld [vmem:[#allocation2 + $0x1e8] sm:$0xff]  ;;  %v949_v22 = vand.u32 4294901760, %v948_v41  ;;  %v955_v41 = vand.u32 4294901760, %v954_v43  ;;  %v880_v51 = vand.u32 4294901760, %v879_v13 }
  0x7d   :  { %861 = vmatpush.msrb.mxu0 %v3404_v2  ;;  %1006 = vmatpush.msrb.mxu2 %v3407_v25  ;;  %v3537_v14 = vand.u32 4294901760, %v100_v50 }
  0x7e   :  { %914 = vmatpush.msrb.mxu1 %v913_v26  ;;  %1051 = vmatpush.msrb.mxu3 %v3360_v61  ;;  %v943_v26 = vand.u32 4294901760, %v942_v18  ;;  %v3535_v18 = vsub.f32 %v71_v42, %v3507_v40  ;;  %v966_v42 = vsub.f32 %v3496_v20, %v4703_v39 }
  0x7f   :  { %863 = vmatpush.msrb.mxu0 %v3417_v33  ;;  %1009 = vmatpush.msrb.mxu2 %v3420_v8  ;;  %v3559_v39 = vsub.f32 %v100_v50, %v3537_v14 }
  0x80   :  { %920 = vmatpush.msrb.mxu1 %v919_v55  ;;  %1053 = vmatpush.msrb.mxu3 %v3380_v48  ;;  %v3520_v55 = vand.u32 4294901760, %v101_v21  ;;  %v4709_v11 = vand.u32 4294901760, %v3535_v18 }
  0x81   :  { %865 = vmatpush.msrb.mxu0 %v3429_v34  ;;  %1012 = vmatpush.msrb.mxu2 %v3433_v44 }
  0x82   :  { %926 = vmatpush.msrb.mxu1 %v925_v45  ;;  %1055 = vmatpush.msrb.mxu3 %v3393_v3  ;;  %v3528_v45 = vsub.f32 %v102_v47, %v3501_v10  ;;  %v4706_v47 = vand.u32 4294901760, %v3513_v52 }
  0x83   :  { %867 = vmatpush.msrb.mxu0 %v3441_v53  ;;  %1015 = vmatpush.msrb.mxu2 %v3445_v56 }
  0x84   :  { %932 = vmatpush.msrb.mxu1 %v931_v9  ;;  %1057 = vmatpush.msrb.mxu3 %v3404_v2  ;;  %v960_v9 = vsub.f32 %v3484_v1, %v4698_v54  ;;  %v3549_v54 = vsub.f32 %v101_v21, %v3520_v55  ;;  %v4707_v32 = vand.u32 4294901760, %v3528_v45  ;;  %v972_v21 = vsub.f32 %v3513_v52, %v4706_v47 }
  0x85   :  { %869 = vmatpush.msrb.mxu0 %v3455_v12  ;;  %1018 = vmatpush.msrb.mxu2 %v3459_v24  ;;  %v3578_v47 = vsub.f32 %v98_v15, %v3554_v0 }
  0x86   :  { %938 = vmatpush.msrb.mxu1 %v937_v19  ;;  %1059 = vmatpush.msrb.mxu3 %v3417_v33  ;;  %v3542_v19 = vand.u32 4294901760, %v99_v30  ;;  %v961_v43 = vand.u32 4294901760, %v960_v9  ;;  %v967_v9 = vand.u32 4294901760, %v966_v42  ;;  %v4712_v6 = vand.u32 4294901760, %v3549_v54 }
  0x87   :  { %871 = vmatpush.msrb.mxu0 %v3467_v27  ;;  %1021 = vmatpush.msrb.mxu2 %v3471_v28  ;;  %v1229_v17 = vsub.f32 %v3528_v45, %v4707_v32  ;;  %v973_v32 = vand.u32 4294901760, %v972_v21 }
  0x88   :  { %944 = vmatpush.msrb.mxu1 %v943_v26  ;;  %1061 = vmatpush.msrb.mxu3 %v3429_v34  ;;  %v97_v26 = vld [vmem:[#allocation2 + $0x1d0] sm:$0xff]  ;;  %v3567_v13 = vsub.f32 %v99_v30, %v3542_v19  ;;  %v95_v30 = vld [vmem:[#allocation2 + $0x1c0] sm:$0xff]  ;;  %v1235_v23 = vsub.f32 %v3549_v54, %v4712_v6 }
  0x89   :  { %873 = vmatpush.msrb.mxu0 %v3488_v5  ;;  %1024 = vmatpush.msrb.mxu2 %v3484_v1  ;;  %v3571_v50 = vand.u32 4294901760, %v97_v26  ;;  %v1230_v21 = vand.u32 4294901760, %v1229_v17  ;;  %v4773_v17 = vand.u32 4294901760, %v3476_v7 }
  0x8a   :  { %950 = vmatpush.msrb.mxu1 %v949_v22  ;;  %1063 = vmatpush.msrb.mxu3 %v3441_v53  ;;  %v96_v22 = vld [vmem:[#allocation2 + $0x1c8] sm:$0xff]  ;;  %v4713_v15 = vand.u32 4294901760, %v3567_v13 }
  0x8b   :  { %875 = vmatpush.msrb.mxu0 %v3507_v40  ;;  %1027 = vmatpush.msrb.mxu2 %v3496_v20  ;;  %v3586_v42 = vand.u32 4294901760, %v96_v22 }
  0x8c   :  { %956 = vmatpush.msrb.mxu1 %v955_v41  ;;  %1065 = vmatpush.msrb.mxu3 %v3455_v12  ;;  %v978_v41 = vsub.f32 %v3535_v18, %v4709_v11  ;;  %v4714_v11 = vand.u32 4294901760, %v3578_v47  ;;  %v1247_v16 = vsub.f32 %v3567_v13, %v4713_v15 }
  0x8d   :  { %881 = vmatmul.f32.vlgmr.msrb.gmra.mxu0 %v880_v51  ;;  %1030 = vmatpush.msrb.mxu2 %v3513_v52  ;;  %v4711_v51 = vand.u32 4294901760, %v3559_v39 }
  0x8e   :  { %1082 = vmatpush.msra.mxu0 %v887_v58  ;;  %962 = vmatpush.msrb.mxu1 %v961_v43  ;;  %v3597_v58 = vsub.f32 %v97_v26, %v3571_v50  ;;  %v3599_v43 = vand.u32 4294901760, %v95_v30  ;;  %v979_v60 = vand.u32 4294901760, %v978_v41  ;;  %v3611_v26 = vsub.f32 %v96_v22, %v3586_v42  ;;  %v90_v22 = vld [vmem:[#allocation2 + $0x198] sm:$0xff] }
  0x8f   :  { %1067 = vmatpush.msrb.mxu3 %v3467_v27  ;;  %1033 = vmatpush.msrb.mxu2 %v3535_v18  ;;  %v4774_v41 = vand.u32 4294901760, %v3367_v4  ;;  %v1253_v15 = vsub.f32 %v3578_v47, %v4714_v11  ;;  %v4775_v4 = vand.u32 4294901760, %v3372_v29  ;;  %v4777_v11 = vand.u32 4294901760, %v3386_v37 }
  0x90   :  { %1086 = vmatpush.msra.mxu0 %v893_v36  ;;  %968 = vmatpush.msrb.mxu1 %v967_v9  ;;  %v1241_v36 = vsub.f32 %v3559_v39, %v4711_v51  ;;  %v3613_v9 = vand.u32 4294901760, %v94_v59  ;;  %v1236_v51 = vand.u32 4294901760, %v1235_v23  ;;  %v3625_v6 = vsub.f32 %v95_v30, %v3599_v43 }
  0x91   :  { %1069 = vmatpush.msrb.mxu3 %v3488_v5  ;;  %1036 = vmatmul.f32.vlgmr.msrb.gmra.mxu2 %v3476_v7  ;;  %v91_v7 = vld [vmem:[#allocation2 + $0x1a0] sm:$0xff]  ;;  %v4776_v29 = vand.u32 4294901760, %v3597_v58  ;;  %v4778_v37 = vand.u32 4294901760, %v3407_v25  ;;  %v4780_v25 = vand.u32 4294901760, %v3420_v8  ;;  %v4782_v8 = vand.u32 4294901760, %v3433_v44 }
  0x92   :  { %1090 = vmatpush.msra.mxu0 %v899_v38  ;;  %1186 = vmatpush.msra.mxu2 %v3501_v10  ;;  %v92_v38 = vld [vmem:[#allocation2 + $0x1a8] sm:$0xff]  ;;  %v1242_v23 = vand.u32 4294901760, %v1241_v36  ;;  %v3637_v30 = vsub.f32 %v94_v59, %v3613_v9  ;;  %v89_v36 = vld [vmem:[#allocation2 + $0x190] sm:$0xff] }
  0x93   :  { %974 = vmatpush.msrb.mxu1 %v973_v32  ;;  %1071 = vmatpush.msrb.mxu3 %v3507_v40  ;;  %v3627_v32 = vand.u32 4294901760, %v93_v46 }
  0x94   :  { %1075 = vmatmul.f32.vlgmr.msrb.gmra.mxu3 %v4773_v17  ;;  %1094 = vmatpush.msra.mxu0 %v4774_v41  ;;  %v4715_v17 = vand.u32 4294901760, %v3611_v26  ;;  %v3639_v41 = vand.u32 4294901760, %v92_v38 }
  0x95   :  { %1188 = vmatpush.msra.mxu2 %v3520_v55  ;;  %1231 = vmatpush.msra.mxu3 %v1230_v21  ;;  %v1248_v21 = vand.u32 4294901760, %v1247_v16  ;;  %v3649_v59 = vsub.f32 %v93_v46, %v3627_v32  ;;  %v1254_v16 = vand.u32 4294901760, %v1253_v15 }
  0x96   :  { %980 = vmatpush.msrb.mxu1 %v979_v60  ;;  %1098 = vmatpush.msra.mxu0 %v4775_v4  ;;  %v1259_v60 = vsub.f32 %v3597_v58, %v4776_v29  ;;  %v3651_v4 = vand.u32 4294901760, %v91_v7  ;;  %v3662_v46 = vsub.f32 %v92_v38, %v3639_v41  ;;  %v3664_v29 = vand.u32 4294901760, %v90_v22 }
  0x97   :  { %982 = vmatmul.f32.vlgmr.msrb.gmra.mxu1 %v3449_v57  ;;  %1190 = vmatpush.msra.mxu2 %v3537_v14 }
  0x98   :  { %1149 = vmatpush.msra.mxu1 %v3318_v63  ;;  %1237 = vmatpush.msra.mxu3 %v1236_v51  ;;  %v1265_v63 = vsub.f32 %v3611_v26, %v4715_v17  ;;  %v3675_v38 = vsub.f32 %v91_v7, %v3651_v4  ;;  %v88_v17 = vld [vmem:[#allocation2 + $0x188] sm:$0xff]  ;;  %v149_v51 = vld.sshfl [vmem:[#allocation1 + $0x18] sm:$0xff pattern:$0x73625140]  ;;  %v4784_v7 = vand.u32 4294901760, %v3445_v56  ;;  %v4786_v56 = vand.u32 4294901760, %v3459_v24 }
  0x99   :  { %1102 = vmatpush.msra.mxu0 %v4777_v11  ;;  %1192 = vmatpush.msra.mxu2 %v3542_v19  ;;  %v4779_v11 = vand.u32 4294901760, %v3625_v6 }
  0x9a   :  { %1151 = vmatpush.msra.mxu1 %v3325_v49  ;;  %1243 = vmatpush.msra.mxu3 %v1242_v23  ;;  %v1260_v49 = vand.u32 4294901760, %v1259_v60  ;;  %v87_v23 = vld [vmem:[#allocation2 + $0x180] sm:$0xff] }
  0x9b   :  { %1106 = vmatpush.msra.mxu0 %v4778_v37  ;;  %1194 = vmatpush.msra.mxu2 %v3554_v0  ;;  %v1271_v15 = vsub.f32 %v3625_v6, %v4779_v11  ;;  %v3680_v37 = vand.u32 4294901760, %v89_v36  ;;  %v3688_v11 = vsub.f32 %v90_v22, %v3664_v29  ;;  %v1294_v22 = vand.u32 4294901760, %v3675_v38 }
  0x9c   :  { %1153 = vmatpush.msra.mxu1 %v3332_v35  ;;  %1249 = vmatpush.msra.mxu3 %v1248_v21  ;;  %v1266_v35 = vand.u32 4294901760, %v1265_v63  ;;  %v4781_v21 = vand.u32 4294901760, %v3637_v30  ;;  %v4783_v63 = vand.u32 4294901760, %v3649_v59 }
  0x9d   :  { %1110 = vmatpush.msra.mxu0 %v4780_v25  ;;  %1196 = vmatpush.msra.mxu2 %v3571_v50  ;;  %v3693_v25 = vand.u32 4294901760, %v88_v17  ;;  %v3706_v44 = vsub.f32 %v89_v36, %v3680_v37 }
  0x9e   :  { %1155 = vmatpush.msra.mxu1 %v3342_v31  ;;  %1255 = vmatpush.msra.mxu3 %v1254_v16  ;;  %v1277_v60 = vsub.f32 %v3637_v30, %v4781_v21  ;;  %v3695_v31 = vand.u32 4294901760, %v149_v51  ;;  %v1272_v16 = vand.u32 4294901760, %v1271_v15  ;;  %v1283_v21 = vsub.f32 %v3649_v59, %v4783_v63 }
  0x9f   :  { %1114 = vmatpush.msra.mxu0 %v4782_v8  ;;  %1198 = vmatpush.msra.mxu2 %v3586_v42  ;;  %v3708_v8 = vand.u32 4294901760, %v87_v23  ;;  %v1300_v63 = vand.u32 4294901760, %v3688_v11  ;;  %v3719_v36 = vsub.f32 %v88_v17, %v3693_v25  ;;  %v1306_v24 = vand.u32 4294901760, %v3706_v44 }
  0xa0   :  { %1157 = vmatpush.msra.mxu1 %v3349_v62  ;;  %1261 = vmatpush.msra.mxu3 %v1260_v49  ;;  %v1278_v62 = vand.u32 4294901760, %v1277_v60  ;;  %v4785_v49 = vand.u32 4294901760, %v3662_v46  ;;  %v4787_v60 = vand.u32 4294901760, %v3471_v28 }
  0xa1   :  { %1118 = vmatpush.msra.mxu0 %v4784_v7  ;;  %1200 = vmatpush.msra.mxu2 %v3599_v43  ;;  %v3722_v7 = vsub.f32 %v149_v51, %v3695_v31  ;;  %v3733_v17 = vsub.f32 %v87_v23, %v3708_v8  ;;  %v1301_v51 = vsub.f32 %v3688_v11, %v1300_v63  ;;  %v1312_v28 = vand.u32 4294901760, %v3719_v36 }
  0xa2   :  { %1159 = vmatpush.msra.mxu1 %v3360_v61  ;;  %1267 = vmatpush.msra.mxu3 %v1266_v35  ;;  %v1289_v15 = vsub.f32 %v3662_v46, %v4785_v49  ;;  %v1284_v61 = vand.u32 4294901760, %v1283_v21  ;;  %v1295_v35 = vsub.f32 %v3675_v38, %v1294_v22 }
  0xa3   :  { %1122 = vmatpush.msra.mxu0 %v4786_v56  ;;  %1202 = vmatpush.msra.mxu2 %v3613_v9  ;;  %v1219_v21 = vand.u32 4294901760, %v3722_v7  ;;  %v1302_v49 = vand.u32 4294901760, %v1301_v51  ;;  %v109_v51 = vld [vmem:[#allocation2 + $0x230] sm:$0xff] }
  0xa4   :  { %1161 = vmatpush.msra.mxu1 %v3380_v48  ;;  %1273 = vmatpush.msra.mxu3 %v1272_v16  ;;  %v1290_v48 = vand.u32 4294901760, %v1289_v15  ;;  %v4788_v16 = vand.u32 4294901760, %v3484_v1  ;;  %v1296_v23 = vand.u32 4294901760, %v1295_v35  ;;  %v1307_v1 = vsub.f32 %v3706_v44, %v1306_v24 }
  0xa5   :  { %1126 = vmatpush.msra.mxu0 %v4787_v60  ;;  %1204 = vmatpush.msra.mxu2 %v3627_v32  ;;  %v4790_v15 = vand.u32 4294901760, %v3513_v52  ;;  %v110_v60 = vld [vmem:[#allocation2 + $0x238] sm:$0xff] }
  0xa6   :  { %1163 = vmatpush.msra.mxu1 %v3393_v3  ;;  %1279 = vmatpush.msra.mxu3 %v1278_v62  ;;  %v4789_v3 = vand.u32 4294901760, %v3496_v20  ;;  %v1318_v62 = vand.u32 4294901760, %v3733_v17  ;;  %v1220_v20 = vsub.f32 %v3722_v7, %v1219_v21  ;;  %v1308_v52 = vand.u32 4294901760, %v1307_v1  ;;  %v108_v1 = vld [vmem:[#allocation2 + $0x228] sm:$0xff] }
  0xa7   :  { %1130 = vmatpush.msra.mxu0 %v4788_v16  ;;  %1206 = vmatpush.msra.mxu2 %v3639_v41 }
  0xa8   :  { %1165 = vmatpush.msra.mxu1 %v3404_v2  ;;  %1285 = vmatpush.msra.mxu3 %v1284_v61  ;;  %v1313_v2 = vsub.f32 %v3719_v36, %v1312_v28  ;;  %v1319_v56 = vsub.f32 %v3733_v17, %v1318_v62 }
  0xa9   :  { %1134 = vmatpush.msra.mxu0 %v4789_v3  ;;  %1208 = vmatpush.msra.mxu2 %v3651_v4 }
  0xaa   :  { %1167 = vmatpush.msra.mxu1 %v3417_v33  ;;  %1291 = vmatpush.msra.mxu3 %v1290_v48  ;;  %v4791_v33 = vand.u32 4294901760, %v3535_v18  ;;  %v1314_v61 = vand.u32 4294901760, %v1313_v2  ;;  %v1320_v18 = vand.u32 4294901760, %v1319_v56  ;;  %v107_v2 = vld [vmem:[#allocation2 + $0x220] sm:$0xff] }
  0xab   :  { %1138 = vmatpush.msra.mxu0 %v4790_v15  ;;  %1210 = vmatpush.msra.mxu2 %v3664_v29 }
  0xac   :  { %1169 = vmatpush.msra.mxu1 %v3429_v34  ;;  %1297 = vmatpush.msra.mxu3 %v1296_v23  ;;  %v1221_v34 = vand.u32 4294901760, %v1220_v20  ;;  %v3917_v23 = vand.u32 4294901760, %v110_v60 }
  0xad   :  { %1142 = vmatpush.msra.mxu0 %v4791_v33  ;;  %1212 = vmatpush.msra.mxu2 %v3680_v37  ;;  %v3942_v33 = vand.u32 4294901760, %v108_v1 }
  0xae   :  { %1171 = vmatpush.msra.mxu1 %v3441_v53  ;;  %1303 = vmatpush.msra.mxu3 %v1302_v49  ;;  %v4792_v53 = vand.u32 4294901760, %v3528_v45  ;;  %v3930_v49 = vand.u32 4294901760, %v109_v51  ;;  %v3946_v56 = vsub.f32 %v110_v60, %v3917_v23 }
  0xaf   :  { %1144 = vmatmul.f32.vlgmr.msra.gmra.mxu0 %v3449_v57  ;;  %1214 = vmatpush.msra.mxu2 %v3693_v25 }
  0xb0   :  { %1329 = vmatpush.msrb.mxu0 %v3528_v45  ;;  %1173 = vmatpush.msra.mxu1 %v3455_v12  ;;  %v4793_v12 = vand.u32 4294901760, %v3549_v54 }
  0xb1   :  { %1309 = vmatpush.msra.mxu3 %v1308_v52  ;;  %1216 = vmatpush.msra.mxu2 %v3708_v8 }
  0xb2   :  { %1332 = vmatpush.msrb.mxu0 %v3549_v54  ;;  %1175 = vmatpush.msra.mxu1 %v3467_v27  ;;  %v4794_v27 = vand.u32 4294901760, %v3559_v39  ;;  %v4798_v54 = vand.u32 4294901760, %v3611_v26 }
  0xb3   :  { %1315 = vmatpush.msra.mxu3 %v1314_v61  ;;  %1222 = vmatmul.f32.vlgmr.msra.gmra.mxu2 %v1221_v34  ;;  %v106_v61 = vld [vmem:[#allocation2 + $0x218] sm:$0xff] }
  0xb4   :  { %1335 = vmatpush.msrb.mxu0 %v3559_v39  ;;  %1423 = vmatpush.msrb.mxu2 %v4792_v53  ;;  %v4800_v39 = vand.u32 4294901760, %v3637_v30 }
  0xb5   :  { %1177 = vmatpush.msra.mxu1 %v3488_v5  ;;  %1321 = vmatpush.msra.mxu3 %v1320_v18  ;;  %v4795_v5 = vand.u32 4294901760, %v3567_v13  ;;  %v3954_v18 = vand.u32 4294901760, %v107_v2 }
  0xb6   :  { %1323 = vmatmul.f32.vlgmr.msra.gmra.mxu3 %v3695_v31  ;;  %1338 = vmatpush.msrb.mxu0 %v3567_v13 }
  0xb7   :  { %1427 = vmatpush.msrb.mxu2 %v4793_v12  ;;  %1490 = vmatpush.msrb.mxu3 %v3501_v10  ;;  %v3958_v12 = vsub.f32 %v109_v51, %v3930_v49 }
  0xb8   :  { %1179 = vmatpush.msra.mxu1 %v3507_v40  ;;  %1341 = vmatpush.msrb.mxu0 %v3578_v47  ;;  %v38_v40 = vld [vmem:[%s4672_s0 + $0x8] sm:$0x3f] }
  0xb9   :  { %1181 = vmatmul.f32.vlgmr.msra.gmra.mxu1 %v3449_v57  ;;  %1431 = vmatpush.msrb.mxu2 %v4794_v27  ;;  %v4796_v57 = vand.u32 4294901760, %v3578_v47  ;;  %145 = vst [vmem:[#allocation1 + $0x20] ss:$4 sm:$0xff] %v38_v40  ;;  %v4802_v47 = vand.u32 4294901760, %v3662_v46  ;;  %v3968_v40 = vand.u32 4294901760, %v106_v61 }
  0xba   :  { %1382 = vmatpush.msrb.mxu1 %v3501_v10  ;;  %1492 = vmatpush.msrb.mxu3 %v3520_v55  ;;  %v4797_v10 = vand.u32 4294901760, %v3597_v58 }
  0xbb   :  { %1344 = vmatpush.msrb.mxu0 %v3597_v58  ;;  %1435 = vmatpush.msrb.mxu2 %v4795_v5  ;;  %v105_v5 = vld [vmem:[#allocation2 + $0x210] sm:$0xff] }
  0xbc   :  { %1384 = vmatpush.msrb.mxu1 %v3520_v55  ;;  %1494 = vmatpush.msrb.mxu3 %v3537_v14  ;;  %v118_v55 = vld [vmem:[#allocation2 + $0x278] sm:$0xff] }
  0xbd   :  { %1347 = vmatpush.msrb.mxu0 %v3611_v26  ;;  %1439 = vmatpush.msrb.mxu2 %v4796_v57  ;;  %v3831_v45 = vand.u32 4294901760, %v118_v55 }
  0xbe   :  { %1386 = vmatpush.msrb.mxu1 %v3537_v14  ;;  %1496 = vmatpush.msrb.mxu3 %v3542_v19  ;;  %v4799_v14 = vand.u32 4294901760, %v3625_v6 }
  0xbf   :  { %1350 = vmatpush.msrb.mxu0 %v3625_v6  ;;  %1443 = vmatpush.msrb.mxu2 %v4797_v10  ;;  %v117_v6 = vld [vmem:[#allocation2 + $0x270] sm:$0xff]  ;;  %v3848_v58 = vsub.f32 %v118_v55, %v3831_v45 }
  0xc0   :  { %1388 = vmatpush.msrb.mxu1 %v3542_v19  ;;  %1498 = vmatpush.msrb.mxu3 %v3554_v0  ;;  %v116_v19 = vld [vmem:[#allocation2 + $0x268] sm:$0xff]  ;;  %v3838_v13 = vand.u32 4294901760, %v117_v6 }
  0xc1   :  { %1353 = vmatpush.msrb.mxu0 %v3637_v30  ;;  %1447 = vmatpush.msrb.mxu2 %v4798_v54  ;;  %v4720_v54 = vand.u32 4294901760, %v3946_v56 }
  0xc2   :  { %1390 = vmatpush.msrb.mxu1 %v3554_v0  ;;  %1500 = vmatpush.msrb.mxu3 %v3571_v50  ;;  %v4801_v0 = vand.u32 4294901760, %v3649_v59 }
  0xc3   :  { %1356 = vmatpush.msrb.mxu0 %v3649_v59  ;;  %1451 = vmatpush.msrb.mxu2 %v4799_v14  ;;  %v3972_v14 = vsub.f32 %v108_v1, %v3942_v33 }
  0xc4   :  { %1392 = vmatpush.msrb.mxu1 %v3571_v50  ;;  %1502 = vmatpush.msrb.mxu3 %v3586_v42  ;;  %v115_v50 = vld [vmem:[#allocation2 + $0x260] sm:$0xff] }
  0xc5   :  { %1359 = vmatpush.msrb.mxu0 %v3662_v46  ;;  %1455 = vmatpush.msrb.mxu2 %v4800_v39  ;;  %v3855_v26 = vand.u32 4294901760, %v115_v50 }
  0xc6   :  { %1394 = vmatpush.msrb.mxu1 %v3586_v42  ;;  %1504 = vmatpush.msrb.mxu3 %v3599_v43  ;;  %v3845_v42 = vand.u32 4294901760, %v116_v19 }
  0xc7   :  { %1362 = vmatpush.msrb.mxu0 %v3675_v38  ;;  %1459 = vmatpush.msrb.mxu2 %v4801_v0  ;;  %v112_v38 = vld [vmem:[#allocation2 + $0x248] sm:$0xff]  ;;  %v3980_v0 = vand.u32 4294901760, %v105_v5 }
  0xc8   :  { %1396 = vmatpush.msrb.mxu1 %v3599_v43  ;;  %1506 = vmatpush.msrb.mxu3 %v3613_v9  ;;  %v114_v43 = vld [vmem:[#allocation2 + $0x258] sm:$0xff]  ;;  %v3869_v59 = vsub.f32 %v116_v19, %v3845_v42  ;;  %v104_v19 = vld [vmem:[#allocation2 + $0x208] sm:$0xff] }
  0xc9   :  { %1365 = vmatpush.msrb.mxu0 %v3688_v11  ;;  %1463 = vmatpush.msrb.mxu2 %v4802_v47  ;;  %v3863_v30 = vand.u32 4294901760, %v114_v43  ;;  %v3880_v11 = vsub.f32 %v115_v50, %v3855_v26  ;;  %v3984_v47 = vsub.f32 %v107_v2, %v3954_v18  ;;  %v4001_v60 = vand.u32 4294901760, %v104_v19 }
  0xca   :  { %1398 = vmatpush.msrb.mxu1 %v3613_v9  ;;  %1508 = vmatpush.msrb.mxu3 %v3627_v32  ;;  %v3858_v9 = vsub.f32 %v117_v6, %v3838_v13  ;;  %v4719_v6 = vand.u32 4294901760, %v3958_v12  ;;  %v4009_v1 = vsub.f32 %v105_v5, %v3980_v0 }
  0xcb   :  { %1368 = vmatpush.msrb.mxu0 %v3706_v44  ;;  %1467 = vmatpush.msrb.mxu2 %v1294_v22  ;;  %v3886_v22 = vsub.f32 %v114_v43, %v3863_v30  ;;  %v111_v44 = vld [vmem:[#allocation2 + $0x240] sm:$0xff] }
  0xcc   :  { %1400 = vmatpush.msrb.mxu1 %v3627_v32  ;;  %1510 = vmatpush.msrb.mxu3 %v3639_v41  ;;  %v113_v32 = vld [vmem:[#allocation2 + $0x250] sm:$0xff] }
  0xcd   :  { %1371 = vmatpush.msrb.mxu0 %v3719_v36  ;;  %1471 = vmatpush.msrb.mxu2 %v1300_v63  ;;  %v3874_v46 = vand.u32 4294901760, %v113_v32  ;;  %v3893_v63 = vand.u32 4294901760, %v112_v38  ;;  %v1581_v36 = vand.u32 4294901760, %v3869_v59  ;;  %v4725_v48 = vand.u32 4294901760, %v3886_v22 }
  0xce   :  { %1402 = vmatpush.msrb.mxu1 %v3639_v41  ;;  %1512 = vmatpush.msrb.mxu3 %v3651_v4  ;;  %v1569_v41 = vand.u32 4294901760, %v3848_v58 }
  0xcf   :  { %1374 = vmatpush.msrb.mxu0 %v3733_v17  ;;  %1475 = vmatpush.msrb.mxu2 %v1306_v24  ;;  %v3899_v35 = vsub.f32 %v113_v32, %v3874_v46  ;;  %v3906_v24 = vand.u32 4294901760, %v111_v44  ;;  %v4728_v17 = vand.u32 4294901760, %v3880_v11  ;;  %v3920_v3 = vsub.f32 %v112_v38, %v3893_v63 }
  0xd0   :  { %1404 = vmatpush.msrb.mxu1 %v3651_v4  ;;  %1514 = vmatpush.msrb.mxu3 %v3664_v29  ;;  %v1575_v4 = vand.u32 4294901760, %v3858_v9  ;;  %v1618_v32 = vsub.f32 %v3946_v56, %v4720_v54  ;;  %v4717_v38 = vand.u32 4294901760, %v3972_v14 }
  0xd1   :  { %1377 = vmatmul.f32.vlgmr.msrb.gmra.mxu0 %v3722_v7  ;;  %1479 = vmatpush.msrb.mxu2 %v1312_v28  ;;  %v1582_v28 = vsub.f32 %v3869_v59, %v1581_v36  ;;  %v3933_v15 = vsub.f32 %v111_v44, %v3906_v24  ;;  %v4722_v52 = vand.u32 4294901760, %v3920_v3  ;;  %v150_v7 = vld.sshfl [vmem:[#allocation1 + $0x20] sm:$0xff pattern:$0x73625140]  ;;  %v3997_v44 = vsub.f32 %v106_v61, %v3968_v40 }
  0xd2   :  { %1527 = vmatpush.msra.mxu0 %v3831_v45  ;;  %1406 = vmatpush.msrb.mxu1 %v3664_v29  ;;  %v1570_v29 = vsub.f32 %v3848_v58, %v1569_v41  ;;  %v3962_v57 = vand.u32 4294901760, %v150_v7  ;;  %v1619_v2 = vand.u32 4294901760, %v1618_v32  ;;  %v4026_v61 = vsub.f32 %v104_v19, %v4001_v60 }
  0xd3   :  { %1516 = vmatpush.msrb.mxu3 %v3680_v37  ;;  %1483 = vmatpush.msrb.mxu2 %v1318_v62  ;;  %v1588_v62 = vsub.f32 %v3880_v11, %v4728_v17  ;;  %v1583_v20 = vand.u32 4294901760, %v1582_v28  ;;  %v4721_v53 = vand.u32 4294901760, %v3933_v15  ;;  %v1606_v10 = vsub.f32 %v3920_v3, %v4722_v52  ;;  %v126_v17 = vld [vmem:[#allocation2 + $0x2b8] sm:$0xff] }
  0xd4   :  { %1529 = vmatpush.msra.mxu0 %v3838_v13  ;;  %1408 = vmatpush.msrb.mxu1 %v3680_v37  ;;  %v1576_v37 = vsub.f32 %v3858_v9, %v1575_v4  ;;  %v1571_v16 = vand.u32 4294901760, %v1570_v29  ;;  %v3989_v50 = vsub.f32 %v150_v7, %v3962_v57  ;;  %v134_v29 = vld [vmem:[#allocation2 + $0x2f8] sm:$0xff]  ;;  %v4716_v28 = vand.u32 4294901760, %v3984_v47 }
  0xd5   :  { %1518 = vmatpush.msrb.mxu3 %v3693_v25  ;;  %1485 = vmatmul.f32.vlgmr.msrb.gmra.mxu2 %v3695_v31  ;;  %v1589_v34 = vand.u32 4294901760, %v1588_v62  ;;  %v1612_v55 = vsub.f32 %v3933_v15, %v4721_v53  ;;  %v1607_v43 = vand.u32 4294901760, %v1606_v10  ;;  %v4014_v62 = vand.u32 4294901760, %v134_v29 }
  0xd6   :  { %1531 = vmatpush.msra.mxu0 %v3845_v42  ;;  %1670 = vmatpush.msra.mxu2 %v3848_v58  ;;  %v1636_v5 = vsub.f32 %v3984_v47, %v4716_v28  ;;  %v4723_v10 = vand.u32 4294901760, %v4009_v1 }
  0xd7   :  { %1410 = vmatpush.msrb.mxu1 %v3693_v25  ;;  %1520 = vmatpush.msrb.mxu3 %v3708_v8  ;;  %v4724_v25 = vand.u32 4294901760, %v3899_v35  ;;  %v1613_v51 = vand.u32 4294901760, %v1612_v55  ;;  %v131_v55 = vld [vmem:[#allocation2 + $0x2e0] sm:$0xff] }
  0xd8   :  { %1522 = vmatmul.f32.vlgmr.msrb.gmra.mxu3 %v3695_v31  ;;  %1533 = vmatpush.msra.mxu0 %v3855_v26  ;;  %v1577_v31 = vand.u32 4294901760, %v1576_v37  ;;  %v103_v37 = vld [vmem:[#allocation2 + $0x200] sm:$0xff] }
  0xd9   :  { %1673 = vmatpush.msra.mxu2 %v3858_v9  ;;  %1723 = vmatpush.msra.mxu3 %v3831_v45  ;;  %v4020_v7 = vand.u32 4294901760, %v103_v37 }
  0xda   :  { %1412 = vmatpush.msrb.mxu1 %v3708_v8  ;;  %1535 = vmatpush.msra.mxu0 %v3863_v30  ;;  %v1594_v8 = vsub.f32 %v3886_v22, %v4725_v48 }
  0xdb   :  { %1416 = vmatmul.f32.vlgmr.msrb.gmra.mxu1 %v1219_v21  ;;  %1676 = vmatpush.msra.mxu2 %v3869_v59  ;;  %v1600_v21 = vsub.f32 %v3899_v35, %v4724_v25 }
  0xdc   :  { %1572 = vmatpush.msra.mxu1 %v1571_v16  ;;  %1725 = vmatpush.msra.mxu3 %v3838_v13  ;;  %v1595_v27 = vand.u32 4294901760, %v1594_v8  ;;  %v1624_v16 = vsub.f32 %v3958_v12, %v4719_v6  ;;  %v133_v8 = vld [vmem:[#allocation2 + $0x2f0] sm:$0xff] }
  0xdd   :  { %1537 = vmatpush.msra.mxu0 %v3874_v46  ;;  %1679 = vmatpush.msra.mxu2 %v3880_v11  ;;  %v1601_v39 = vand.u32 4294901760, %v1600_v21  ;;  %v4718_v21 = vand.u32 4294901760, %v3997_v44 }
  0xde   :  { %1578 = vmatpush.msra.mxu1 %v1577_v31  ;;  %1727 = vmatpush.msra.mxu3 %v3845_v42  ;;  %v4730_v31 = vand.u32 4294901760, %v3989_v50 }
  0xdf   :  { %1539 = vmatpush.msra.mxu0 %v3893_v63  ;;  %1682 = vmatpush.msra.mxu2 %v3886_v22 }
  0xe0   :  { %1584 = vmatpush.msra.mxu1 %v1583_v20  ;;  %1729 = vmatpush.msra.mxu3 %v3855_v26  ;;  %v1630_v20 = vsub.f32 %v3972_v14, %v4717_v38  ;;  %v1561_v19 = vsub.f32 %v3989_v50, %v4730_v31  ;;  %v130_v38 = vld [vmem:[#allocation2 + $0x2d8] sm:$0xff]  ;;  %v125_v31 = vld [vmem:[#allocation2 + $0x2b0] sm:$0xff] }
  0xe1   :  { %1541 = vmatpush.msra.mxu0 %v3906_v24  ;;  %1685 = vmatpush.msra.mxu2 %v3899_v35  ;;  %v4067_v53 = vand.u32 4294901760, %v130_v38 }
  0xe2   :  { %1590 = vmatpush.msra.mxu1 %v1589_v34  ;;  %1731 = vmatpush.msra.mxu3 %v3863_v30  ;;  %v132_v34 = vld [vmem:[#allocation2 + $0x2e8] sm:$0xff]  ;;  %v1631_v32 = vand.u32 4294901760, %v1630_v20  ;;  %v1637_v20 = vand.u32 4294901760, %v1636_v5  ;;  %v1562_v6 = vand.u32 4294901760, %v1561_v19 }
  0xe3   :  { %1543 = vmatpush.msra.mxu0 %v3917_v23  ;;  %1688 = vmatpush.msra.mxu2 %v3920_v3  ;;  %v4050_v28 = vand.u32 4294901760, %v132_v34 }
  0xe4   :  { %1596 = vmatpush.msra.mxu1 %v1595_v27  ;;  %1733 = vmatpush.msra.mxu3 %v3874_v46  ;;  %v1625_v27 = vand.u32 4294901760, %v1624_v16  ;;  %v4048_v16 = vsub.f32 %v103_v37, %v4020_v7  ;;  %v1648_v37 = vsub.f32 %v4009_v1, %v4723_v10 }
  0xe5   :  { %1545 = vmatpush.msra.mxu0 %v3930_v49  ;;  %1691 = vmatpush.msra.mxu2 %v3933_v15  ;;  %v4072_v10 = vsub.f32 %v132_v34, %v4050_v28 }
  0xe6   :  { %1602 = vmatpush.msra.mxu1 %v1601_v39  ;;  %1735 = vmatpush.msra.mxu3 %v3893_v63  ;;  %v4033_v39 = vand.u32 4294901760, %v133_v8  ;;  %v4729_v52 = vand.u32 4294901760, %v4048_v16 }
  0xe7   :  { %1547 = vmatpush.msra.mxu0 %v3942_v33  ;;  %1694 = vmatpush.msra.mxu2 %v3946_v56 }
  0xe8   :  { %1608 = vmatpush.msra.mxu1 %v1607_v43  ;;  %1737 = vmatpush.msra.mxu3 %v3906_v24  ;;  %v4041_v43 = vsub.f32 %v134_v29, %v4014_v62  ;;  %v4726_v29 = vand.u32 4294901760, %v4026_v61 }
  0xe9   :  { %1549 = vmatpush.msra.mxu0 %v3954_v18  ;;  %1697 = vmatpush.msra.mxu2 %v3958_v12 }
  0xea   :  { %1614 = vmatpush.msra.mxu1 %v1613_v51  ;;  %1739 = vmatpush.msra.mxu3 %v3917_v23  ;;  %v1642_v51 = vsub.f32 %v3997_v44, %v4718_v21  ;;  %v4062_v21 = vsub.f32 %v133_v8, %v4033_v39  ;;  %v4727_v54 = vand.u32 4294901760, %v4041_v43  ;;  %v1654_v8 = vsub.f32 %v4026_v61, %v4726_v29 }
  0xeb   :  { %1551 = vmatpush.msra.mxu0 %v3968_v40  ;;  %1700 = vmatpush.msra.mxu2 %v3972_v14  ;;  %v4091_v29 = vsub.f32 %v130_v38, %v4067_v53 }
  0xec   :  { %1620 = vmatpush.msra.mxu1 %v1619_v2  ;;  %1741 = vmatpush.msra.mxu3 %v3930_v49  ;;  %v4055_v2 = vand.u32 4294901760, %v131_v55  ;;  %v1643_v5 = vand.u32 4294901760, %v1642_v51  ;;  %v1649_v51 = vand.u32 4294901760, %v1648_v37  ;;  %v4732_v25 = vand.u32 4294901760, %v4062_v21 }
  0xed   :  { %1553 = vmatpush.msra.mxu0 %v3980_v0  ;;  %1703 = vmatpush.msra.mxu2 %v3984_v47  ;;  %v1911_v48 = vsub.f32 %v4041_v43, %v4727_v54  ;;  %v1655_v54 = vand.u32 4294901760, %v1654_v8 }
  0xee   :  { %1626 = vmatpush.msra.mxu1 %v1625_v27  ;;  %1743 = vmatpush.msra.mxu3 %v3942_v33  ;;  %v129_v27 = vld [vmem:[#allocation2 + $0x2d0] sm:$0xff]  ;;  %v4080_v19 = vsub.f32 %v131_v55, %v4055_v2  ;;  %v127_v55 = vld [vmem:[#allocation2 + $0x2c0] sm:$0xff]  ;;  %v1917_v58 = vsub.f32 %v4062_v21, %v4732_v25 }
  0xef   :  { %1555 = vmatpush.msra.mxu0 %v4001_v60  ;;  %1706 = vmatpush.msra.mxu2 %v3997_v44  ;;  %v4084_v34 = vand.u32 4294901760, %v129_v27  ;;  %v1912_v8 = vand.u32 4294901760, %v1911_v48  ;;  %v4803_v48 = vand.u32 4294901760, %v3989_v50 }
  0xf0   :  { %1632 = vmatpush.msra.mxu1 %v1631_v32  ;;  %1745 = vmatpush.msra.mxu3 %v3954_v18  ;;  %v128_v32 = vld [vmem:[#allocation2 + $0x2c8] sm:$0xff]  ;;  %v4733_v38 = vand.u32 4294901760, %v4080_v19 }
  0xf1   :  { %1557 = vmatpush.msra.mxu0 %v4020_v7  ;;  %1709 = vmatpush.msra.mxu2 %v4009_v1  ;;  %v4099_v37 = vand.u32 4294901760, %v128_v32 }
  0xf2   :  { %1638 = vmatpush.msra.mxu1 %v1637_v20  ;;  %1747 = vmatpush.msra.mxu3 %v3968_v40  ;;  %v1660_v20 = vsub.f32 %v4048_v16, %v4729_v52  ;;  %v4734_v52 = vand.u32 4294901760, %v4091_v29  ;;  %v1929_v59 = vsub.f32 %v4080_v19, %v4733_v38 }
  0xf3   :  { %1563 = vmatmul.f32.vlgmr.msra.gmra.mxu0 %v1562_v6  ;;  %1712 = vmatpush.msra.mxu2 %v4026_v61  ;;  %v4731_v6 = vand.u32 4294901760, %v4072_v10 }
  0xf4   :  { %1764 = vmatpush.msrb.mxu0 %v1569_v41  ;;  %1644 = vmatpush.msra.mxu1 %v1643_v5  ;;  %v4110_v41 = vsub.f32 %v129_v27, %v4084_v34  ;;  %v4112_v5 = vand.u32 4294901760, %v127_v55  ;;  %v1661_v9 = vand.u32 4294901760, %v1660_v20  ;;  %v4124_v27 = vsub.f32 %v128_v32, %v4099_v37  ;;  %v122_v32 = vld [vmem:[#allocation2 + $0x298] sm:$0xff] }
  0xf5   :  { %1749 = vmatpush.msra.mxu3 %v3980_v0  ;;  %1715 = vmatpush.msra.mxu2 %v4048_v16  ;;  %v4804_v20 = vand.u32 4294901760, %v3880_v11  ;;  %v1935_v38 = vsub.f32 %v4091_v29, %v4734_v52  ;;  %v4805_v11 = vand.u32 4294901760, %v3886_v22  ;;  %v4807_v52 = vand.u32 4294901760, %v3899_v35 }
  0xf6   :  { %1768 = vmatpush.msrb.mxu0 %v1575_v4  ;;  %1650 = vmatpush.msra.mxu1 %v1649_v51  ;;  %v1923_v4 = vsub.f32 %v4072_v10, %v4731_v6  ;;  %v4126_v51 = vand.u32 4294901760, %v126_v17  ;;  %v1918_v6 = vand.u32 4294901760, %v1917_v58  ;;  %v4138_v25 = vsub.f32 %v127_v55, %v4112_v5 }
  0xf7   :  { %1751 = vmatpush.msra.mxu3 %v4001_v60  ;;  %1718 = vmatmul.f32.vlgmr.msra.gmra.mxu2 %v3989_v50  ;;  %v123_v50 = vld [vmem:[#allocation2 + $0x2a0] sm:$0xff]  ;;  %v4806_v22 = vand.u32 4294901760, %v4110_v41  ;;  %v4808_v35 = vand.u32 4294901760, %v3920_v3  ;;  %v4810_v3 = vand.u32 4294901760, %v3933_v15  ;;  %v4812_v15 = vand.u32 4294901760, %v3946_v56 }
  0xf8   :  { %1772 = vmatpush.msrb.mxu0 %v1581_v36  ;;  %1868 = vmatpush.msrb.mxu2 %v4014_v62  ;;  %v124_v36 = vld [vmem:[#allocation2 + $0x2a8] sm:$0xff]  ;;  %v1924_v58 = vand.u32 4294901760, %v1923_v4  ;;  %v4150_v55 = vsub.f32 %v126_v17, %v4126_v51  ;;  %v121_v4 = vld [vmem:[#allocation2 + $0x290] sm:$0xff] }
  0xf9   :  { %1656 = vmatpush.msra.mxu1 %v1655_v54  ;;  %1753 = vmatpush.msra.mxu3 %v4020_v7  ;;  %v4140_v54 = vand.u32 4294901760, %v125_v31 }
  0xfa   :  { %1757 = vmatmul.f32.vlgmr.msra.gmra.mxu3 %v4803_v48  ;;  %1776 = vmatpush.msrb.mxu0 %v4804_v20  ;;  %v4735_v48 = vand.u32 4294901760, %v4124_v27  ;;  %v4152_v20 = vand.u32 4294901760, %v124_v36 }
  0xfb   :  { %1870 = vmatpush.msrb.mxu2 %v4033_v39  ;;  %1913 = vmatpush.msrb.mxu3 %v1912_v8  ;;  %v1930_v8 = vand.u32 4294901760, %v1929_v59  ;;  %v4162_v17 = vsub.f32 %v125_v31, %v4140_v54  ;;  %v1936_v59 = vand.u32 4294901760, %v1935_v38 }
  0xfc   :  { %1662 = vmatpush.msra.mxu1 %v1661_v9  ;;  %1780 = vmatpush.msrb.mxu0 %v4805_v11  ;;  %v1941_v9 = vsub.f32 %v4110_v41, %v4806_v22  ;;  %v4164_v11 = vand.u32 4294901760, %v123_v50  ;;  %v4175_v31 = vsub.f32 %v124_v36, %v4152_v20  ;;  %v4177_v22 = vand.u32 4294901760, %v122_v32 }
  0xfd   :  { %1664 = vmatmul.f32.vlgmr.msra.gmra.mxu1 %v3962_v57  ;;  %1872 = vmatpush.msrb.mxu2 %v4050_v28 }
  0xfe   :  { %1831 = vmatpush.msrb.mxu1 %v3831_v45  ;;  %1919 = vmatpush.msrb.mxu3 %v1918_v6  ;;  %v1947_v45 = vsub.f32 %v4124_v27, %v4735_v48  ;;  %v4188_v36 = vsub.f32 %v123_v50, %v4164_v11  ;;  %v120_v48 = vld [vmem:[#allocation2 + $0x288] sm:$0xff]  ;;  %v151_v6 = vld.sshfl [vmem:[#allocation1 + $0x28] sm:$0xff pattern:$0x73625140]  ;;  %v4814_v50 = vand.u32 4294901760, %v3958_v12  ;;  %v4816_v12 = vand.u32 4294901760, %v3972_v14 }
  0xff   :  { %1784 = vmatpush.msrb.mxu0 %v4807_v52  ;;  %1874 = vmatpush.msrb.mxu2 %v4055_v2  ;;  %v4809_v52 = vand.u32 4294901760, %v4138_v25 }
 0x100   :  { %1833 = vmatpush.msrb.mxu1 %v3838_v13  ;;  %1925 = vmatpush.msrb.mxu3 %v1924_v58  ;;  %v1942_v13 = vand.u32 4294901760, %v1941_v9  ;;  %v119_v58 = vld [vmem:[#allocation2 + $0x280] sm:$0xff] }
 0x101   :  { %1788 = vmatpush.msrb.mxu0 %v4808_v35  ;;  %1876 = vmatpush.msrb.mxu2 %v4067_v53  ;;  %v1953_v38 = vsub.f32 %v4138_v25, %v4809_v52  ;;  %v4193_v35 = vand.u32 4294901760, %v121_v4  ;;  %v4201_v52 = vsub.f32 %v122_v32, %v4177_v22  ;;  %v1976_v32 = vand.u32 4294901760, %v4188_v36 }
 0x102   :  { %1835 = vmatpush.msrb.mxu1 %v3845_v42  ;;  %1931 = vmatpush.msrb.mxu3 %v1930_v8  ;;  %v1948_v42 = vand.u32 4294901760, %v1947_v45  ;;  %v4811_v8 = vand.u32 4294901760, %v4150_v55  ;;  %v4813_v45 = vand.u32 4294901760, %v4162_v17 }
 0x103   :  { %1792 = vmatpush.msrb.mxu0 %v4810_v3  ;;  %1878 = vmatpush.msrb.mxu2 %v4084_v34  ;;  %v4206_v3 = vand.u32 4294901760, %v120_v48  ;;  %v4219_v56 = vsub.f32 %v121_v4, %v4193_v35 }
 0x104   :  { %1837 = vmatpush.msrb.mxu1 %v3855_v26  ;;  %1937 = vmatpush.msrb.mxu3 %v1936_v59  ;;  %v1959_v9 = vsub.f32 %v4150_v55, %v4811_v8  ;;  %v4208_v26 = vand.u32 4294901760, %v151_v6  ;;  %v1954_v59 = vand.u32 4294901760, %v1953_v38  ;;  %v1965_v8 = vsub.f32 %v4162_v17, %v4813_v45 }
 0x105   :  { %1796 = vmatpush.msrb.mxu0 %v4812_v15  ;;  %1880 = vmatpush.msrb.mxu2 %v4099_v37  ;;  %v4221_v15 = vand.u32 4294901760, %v119_v58  ;;  %v1982_v45 = vand.u32 4294901760, %v4201_v52  ;;  %v4232_v4 = vsub.f32 %v120_v48, %v4206_v3  ;;  %v1988_v14 = vand.u32 4294901760, %v4219_v56 }
 0x106   :  { %1839 = vmatpush.msrb.mxu1 %v3863_v30  ;;  %1943 = vmatpush.msrb.mxu3 %v1942_v13  ;;  %v1960_v30 = vand.u32 4294901760, %v1959_v9  ;;  %v4815_v13 = vand.u32 4294901760, %v4175_v31  ;;  %v4817_v9 = vand.u32 4294901760, %v3984_v47 }
 0x107   :  { %1800 = vmatpush.msrb.mxu0 %v4814_v50  ;;  %1882 = vmatpush.msrb.mxu2 %v4112_v5  ;;  %v4235_v50 = vsub.f32 %v151_v6, %v4208_v26  ;;  %v4246_v48 = vsub.f32 %v119_v58, %v4221_v15  ;;  %v1983_v6 = vsub.f32 %v4201_v52, %v1982_v45  ;;  %v1994_v47 = vand.u32 4294901760, %v4232_v4 }
 0x108   :  { %1841 = vmatpush.msrb.mxu1 %v3874_v46  ;;  %1949 = vmatpush.msrb.mxu3 %v1948_v42  ;;  %v1971_v38 = vsub.f32 %v4175_v31, %v4815_v13  ;;  %v1966_v46 = vand.u32 4294901760, %v1965_v8  ;;  %v1977_v42 = vsub.f32 %v4188_v36, %v1976_v32 }
 0x109   :  { %1804 = vmatpush.msrb.mxu0 %v4816_v12  ;;  %1884 = vmatpush.msrb.mxu2 %v4126_v51  ;;  %v1901_v8 = vand.u32 4294901760, %v4235_v50  ;;  %v1984_v13 = vand.u32 4294901760, %v1983_v6 }
 0x10a   :  { %1843 = vmatpush.msrb.mxu1 %v3893_v63  ;;  %1955 = vmatpush.msrb.mxu3 %v1954_v59  ;;  %v1972_v63 = vand.u32 4294901760, %v1971_v38  ;;  %v4818_v59 = vand.u32 4294901760, %v3997_v44  ;;  %v1978_v58 = vand.u32 4294901760, %v1977_v42  ;;  %v1989_v44 = vsub.f32 %v4219_v56, %v1988_v14 }
 0x10b   :  { %1808 = vmatpush.msrb.mxu0 %v4817_v9  ;;  %1886 = vmatpush.msrb.mxu2 %v4140_v54  ;;  %v4820_v38 = vand.u32 4294901760, %v4026_v61 }
 0x10c   :  { %1845 = vmatpush.msrb.mxu1 %v3906_v24  ;;  %1961 = vmatpush.msrb.mxu3 %v1960_v30  ;;  %v4819_v24 = vand.u32 4294901760, %v4009_v1  ;;  %v2000_v30 = vand.u32 4294901760, %v4246_v48  ;;  %v1902_v1 = vsub.f32 %v4235_v50, %v1901_v8  ;;  %v1990_v61 = vand.u32 4294901760, %v1989_v44 }
 0x10d   :  { %1812 = vmatpush.msrb.mxu0 %v4818_v59  ;;  %1888 = vmatpush.msrb.mxu2 %v4152_v20 }
 0x10e   :  { %1847 = vmatpush.msrb.mxu1 %v3917_v23  ;;  %1967 = vmatpush.msrb.mxu3 %v1966_v46  ;;  %v1995_v23 = vsub.f32 %v4232_v4, %v1994_v47  ;;  %v2001_v12 = vsub.f32 %v4246_v48, %v2000_v30 }
 0x10f   :  { %1816 = vmatpush.msrb.mxu0 %v4819_v24  ;;  %1890 = vmatpush.msrb.mxu2 %v4164_v11 }
 0x110   :  { %1849 = vmatpush.msrb.mxu1 %v3930_v49  ;;  %1973 = vmatpush.msrb.mxu3 %v1972_v63  ;;  %v4821_v49 = vand.u32 4294901760, %v4048_v16  ;;  %v1996_v46 = vand.u32 4294901760, %v1995_v23  ;;  %v2002_v16 = vand.u32 4294901760, %v2001_v12 }
 0x111   :  { %1820 = vmatpush.msrb.mxu0 %v4820_v38  ;;  %1892 = vmatpush.msrb.mxu2 %v4177_v22 }
 0x112   :  { %1851 = vmatpush.msrb.mxu1 %v3942_v33  ;;  %1979 = vmatpush.msrb.mxu3 %v1978_v58  ;;  %v1903_v33 = vand.u32 4294901760, %v1902_v1 }
 0x113   :  { %1824 = vmatpush.msrb.mxu0 %v4821_v49  ;;  %1894 = vmatpush.msrb.mxu2 %v4193_v35  ;;  %v2384_v49 = vld [vmem:[%s4675_s3 + $0x70] sm:$0xff] }
 0x114   :  { %1853 = vmatpush.msrb.mxu1 %v3954_v18  ;;  %1985 = vmatpush.msrb.mxu3 %v1984_v13  ;;  %v4822_v18 = vand.u32 4294901760, %v4041_v43  ;;  %v2385_v13 = vld [vmem:[%s4675_s3 + $0x78] sm:$0xff] }
 0x115   :  { %1826 = vmatmul.f32.vlgmr.msrb.gmra.mxu0 %v3962_v57  ;;  %1896 = vmatpush.msrb.mxu2 %v4206_v3  ;;  %v4389_v23 = vand.u32 4294901760, %v2385_v13 }
 0x116   :  { %2011 = vmatpush.msra.mxu0 %v4041_v43  ;;  %1855 = vmatpush.msrb.mxu1 %v3968_v40  ;;  %v4823_v40 = vand.u32 4294901760, %v4062_v21  ;;  %v4830_v43 = vand.u32 4294901760, %v4150_v55 }
 0x117   :  { %1991 = vmatpush.msrb.mxu3 %v1990_v61  ;;  %1898 = vmatpush.msrb.mxu2 %v4221_v15  ;;  %v4395_v12 = vsub.f32 %v2385_v13, %v4389_v23 }
 0x118   :  { %2014 = vmatpush.msra.mxu0 %v4062_v21  ;;  %1857 = vmatpush.msrb.mxu1 %v3980_v0  ;;  %v4824_v0 = vand.u32 4294901760, %v4072_v10  ;;  %v4828_v21 = vand.u32 4294901760, %v4124_v27 }
 0x119   :  { %1997 = vmatpush.msrb.mxu3 %v1996_v46  ;;  %1904 = vmatmul.f32.vlgmr.msrb.gmra.mxu2 %v1903_v33  ;;  %v4397_v46 = vand.u32 4294901760, %v2384_v49 }
 0x11a   :  { %2017 = vmatpush.msra.mxu0 %v4072_v10  ;;  %2105 = vmatpush.msra.mxu2 %v4822_v18  ;;  %v4829_v10 = vand.u32 4294901760, %v4138_v25  ;;  %v2433_v18 = vand.u32 4294901760, %v4395_v12 }
 0x11b   :  { %1859 = vmatpush.msrb.mxu1 %v4001_v60  ;;  %2003 = vmatpush.msrb.mxu3 %v2002_v16  ;;  %v4825_v60 = vand.u32 4294901760, %v4080_v19  ;;  %v2383_v16 = vld [vmem:[%s4675_s3 + $0x68] sm:$0xff] }
 0x11c   :  { %2005 = vmatmul.f32.vlgmr.msrb.gmra.mxu3 %v4208_v26  ;;  %2020 = vmatpush.msra.mxu0 %v4080_v19 }
 0x11d   :  { %2109 = vmatpush.msra.mxu2 %v4823_v40  ;;  %2172 = vmatpush.msra.mxu3 %v4014_v62  ;;  %v4406_v40 = vsub.f32 %v2384_v49, %v4397_v46 }
 0x11e   :  { %1861 = vmatpush.msrb.mxu1 %v4020_v7  ;;  %2023 = vmatpush.msra.mxu0 %v4091_v29  ;;  %v152_v7 = vld.sshfl [vmem:[#allocation1 + $0x30] sm:$0xff pattern:$0x73625140] }
 0x11f   :  { %1863 = vmatmul.f32.vlgmr.msrb.gmra.mxu1 %v3962_v57  ;;  %2113 = vmatpush.msra.mxu2 %v4824_v0  ;;  %v4826_v57 = vand.u32 4294901760, %v4091_v29  ;;  %v135_v29 = vld [vmem:[#allocation2 + $0x300] sm:$0xff]  ;;  %v4408_v0 = vand.u32 4294901760, %v2383_v16 }
 0x120   :  { %2064 = vmatpush.msra.mxu1 %v4014_v62  ;;  %2174 = vmatpush.msra.mxu3 %v4033_v39  ;;  %v4827_v62 = vand.u32 4294901760, %v4110_v41  ;;  %v2224_v19 = vand.u32 4294901760, %v135_v29 }
 0x121   :  { %2026 = vmatpush.msra.mxu0 %v4110_v41  ;;  %2117 = vmatpush.msra.mxu2 %v4825_v60 }
 0x122   :  { %2066 = vmatpush.msra.mxu1 %v4033_v39  ;;  %2176 = vmatpush.msra.mxu3 %v4050_v28  ;;  %v136_v39 = vld [vmem:[#allocation2 + $0x308] sm:$0xff] }
 0x123   :  { %2029 = vmatpush.msra.mxu0 %v4124_v27  ;;  %2121 = vmatpush.msra.mxu2 %v4826_v57  ;;  %v2382_v57 = vld [vmem:[%s4675_s3 + $0x60] sm:$0xff] }
 0x124   :  { %2068 = vmatpush.msra.mxu1 %v4050_v28  ;;  %2178 = vmatpush.msra.mxu3 %v4055_v2  ;;  %v160_v28 = vsel %vm159_vm0, %v152_v7, 0  ;;  %v2380_v7 = vld [vmem:[%s4675_s3 + $0x50] sm:$0xff] }
 0x125   :  { %2032 = vmatpush.msra.mxu0 %v4138_v25  ;;  %2125 = vmatpush.msra.mxu2 %v4827_v62  ;;  %v4831_v25 = vand.u32 4294901760, %v4162_v17  ;;  %v2381_v62 = vld [vmem:[%s4675_s3 + $0x58] sm:$0xff] }
 0x126   :  { %2070 = vmatpush.msra.mxu1 %v4055_v2  ;;  %2180 = vmatpush.msra.mxu3 %v4067_v53  ;;  %v2222_v2 = vand.u32 4294901760, %v136_v39 }
 0x127   :  { %2035 = vmatpush.msra.mxu0 %v4150_v55  ;;  %2129 = vmatpush.msra.mxu2 %v4828_v21 }
 0x128   :  { %2072 = vmatpush.msra.mxu1 %v4067_v53  ;;  %2182 = vmatpush.msra.mxu3 %v4084_v34  ;;  %v4334_v53 = vand.u32 4294901760, %v160_v28  ;;  %v2250_v41 = vsub.f32 %v136_v39, %v2222_v2  ;;  %v4427_v39 = vsub.f32 %v2383_v16, %v4408_v0 }
 0x129   :  { %2038 = vmatpush.msra.mxu0 %v4162_v17  ;;  %2133 = vmatpush.msra.mxu2 %v4829_v10  ;;  %v2439_v10 = vand.u32 4294901760, %v4406_v40 }
 0x12a   :  { %2074 = vmatpush.msra.mxu1 %v4084_v34  ;;  %2184 = vmatpush.msra.mxu3 %v4099_v37  ;;  %v4832_v34 = vand.u32 4294901760, %v4175_v31 }
 0x12b   :  { %2041 = vmatpush.msra.mxu0 %v4175_v31  ;;  %2137 = vmatpush.msra.mxu2 %v4830_v43  ;;  %v4429_v43 = vand.u32 4294901760, %v2382_v57 }
 0x12c   :  { %2076 = vmatpush.msra.mxu1 %v4099_v37  ;;  %2186 = vmatpush.msra.mxu3 %v4112_v5  ;;  %v2227_v37 = vsub.f32 %v160_v28, %v4334_v53  ;;  %v2434_v28 = vsub.f32 %v4395_v12, %v2433_v18 }
 0x12d   :  { %2044 = vmatpush.msra.mxu0 %v4188_v36  ;;  %2141 = vmatpush.msra.mxu2 %v4831_v25  ;;  %v2754_v36 = vld [vmem:[%s4674_s2] ss:$0 sm:$0xff] }
 0x12e   :  { %2078 = vmatpush.msra.mxu1 %v4112_v5  ;;  %2188 = vmatpush.msra.mxu3 %v4126_v51  ;;  %v2256_v5 = vsub.f32 %v135_v29, %v2224_v19  ;;  %v2228_v27 = vand.u32 4294901760, %v2227_v37  ;;  %v2379_v29 = vld [vmem:[%s4675_s3 + $0x48] sm:$0xff] }
 0x12f   :  { %2047 = vmatpush.msra.mxu0 %v4201_v52  ;;  %2145 = vmatpush.msra.mxu2 %v4832_v34  ;;  %v4440_v25 = vand.u32 4294901760, %v2379_v29  ;;  %v2440_v34 = vsub.f32 %v4406_v40, %v2439_v10 }
 0x130   :  { %2080 = vmatpush.msra.mxu1 %v4126_v51  ;;  %2190 = vmatpush.msra.mxu3 %v4140_v54  ;;  %v2251_v51 = vand.u32 4294901760, %v2250_v41  ;;  %v2229_v55 = vsub.f32 %v2227_v37, %v2228_v27 }
 0x131   :  { %2050 = vmatpush.msra.mxu0 %v4219_v56  ;;  %2149 = vmatpush.msra.mxu2 %v1976_v32  ;;  %v355_v32 = vpop.f32.mrf.mxu2 }
 0x132   :  { %2082 = vmatpush.msra.mxu1 %v4140_v54  ;;  %2192 = vmatpush.msra.mxu3 %v4152_v20  ;;  %v2257_v54 = vand.u32 4294901760, %v2256_v5 }
 0x133   :  { %2053 = vmatpush.msra.mxu0 %v4232_v4  ;;  %2153 = vmatpush.msra.mxu2 %v1982_v45 }
 0x134   :  { %2084 = vmatpush.msra.mxu1 %v4152_v20  ;;  %2194 = vmatpush.msra.mxu3 %v4164_v11  ;;  %v2252_v20 = vsub.f32 %v2250_v41, %v2251_v51  ;;  %v2258_v17 = vsub.f32 %v2256_v5, %v2257_v54 }
 0x135   :  { %2056 = vmatpush.msra.mxu0 %v4246_v48  ;;  %2157 = vmatpush.msra.mxu2 %v1988_v14 }
 0x136   :  { %2086 = vmatpush.msra.mxu1 %v4164_v11  ;;  %2196 = vmatpush.msra.mxu3 %v4177_v22  ;;  %v2230_v11 = vand.u32 4294901760, %v2229_v55  ;;  %v2253_v31 = vand.u32 4294901760, %v2252_v20  ;;  %v2441_v20 = vand.u32 4294901760, %v2440_v34 }
 0x137   :  { %2059 = vmatmul.f32.vlgmr.msra.gmra.mxu0 %v4235_v50  ;;  %2161 = vmatpush.msra.mxu2 %v1994_v47 }
 0x138   :  { %2088 = vmatpush.msra.mxu1 %v4177_v22  ;;  %2198 = vmatpush.msra.mxu3 %v4193_v35  ;;  %v2259_v22 = vand.u32 4294901760, %v2258_v17 }
 0x139   :  { %2165 = vmatpush.msra.mxu2 %v2000_v30  ;;  %2223 = vmatpush.msrb.mxu0 %v2222_v2  ;;  %v541_v14 = vpop.f32.mrf.mxu2 }
 0x13a   :  { %2090 = vmatpush.msra.mxu1 %v4193_v35  ;;  %2200 = vmatpush.msra.mxu3 %v4206_v3  ;;  %v200_v35 = vpop.f32.mrf.mxu0 }
 0x13b   :  { %2167 = vmatmul.f32.vlgmr.msra.gmra.mxu2 %v4208_v26  ;;  %2225 = vmatpush.msrb.mxu0 %v2224_v19  ;;  %v201_v52 = vadd.f32 %v2754_v36, %v200_v35 }
 0x13c   :  { %2092 = vmatpush.msra.mxu1 %v4206_v3  ;;  %2202 = vmatpush.msra.mxu3 %v4221_v15  ;;  %v301_v3 = vpop.f32.mrf.mxu1 }
 0x13d   :  { %2204 = vmatmul.f32.vlgmr.msra.gmra.mxu3 %v4208_v26  ;;  %2282 = vmatpush.msra.mxu0 %v2250_v41  ;;  %v302_v26 = vadd.f32 %v301_v3, %v201_v52  ;;  %v4448_v41 = vsub.f32 %v2382_v57, %v4429_v43 }
 0x13e   :  { %2094 = vmatpush.msra.mxu1 %v4221_v15  ;;  %v394_v15 = vpop.f32.mrf.mxu3  ;;  %2391 = vmatpush.msrb.mxu2 %v4389_v23 }
 0x13f   :  { %2098 = vmatmul.f32.vlgmr.msra.gmra.mxu1 %v1901_v8  ;;  %2231 = vmatmul.f32.vlgmr.msrb.gmra.mxu0 %v2230_v11  ;;  %v356_v56 = vadd.f32 %v355_v32, %v302_v26  ;;  %v2451_v11 = vand.u32 4294901760, %v4448_v41 }
 0x140   :  { %2254 = vmatpush.msrb.mxu1 %v2253_v31  ;;  %2285 = vmatpush.msra.mxu0 %v2256_v5 }
 0x141   :  { %v395_v45 = vadd.f32 %v394_v15, %v356_v56  ;;  %v804_v24 = vpop.f32.mrf.mxu2  ;;  %2393 = vmatpush.msrb.mxu2 %v4397_v46  ;;  %v2452_v3 = vsub.f32 %v4448_v41, %v2451_v11  ;;  %v2378_v15 = vld [vmem:[%s4675_s3 + $0x40] sm:$0xff] }
 0x142   :  { %2334 = vmatpush.msrb.mxu0 %v2251_v51  ;;  %2260 = vmatpush.msrb.mxu1 %v2259_v22  ;;  %v463_v4 = vpop.f32.mrf.mxu0 }
 0x143   :  { %v464_v50 = vadd.f32 %v463_v4, %v395_v45  ;;  %2395 = vmatpush.msrb.mxu2 %v4408_v0  ;;  %v2453_v4 = vand.u32 4294901760, %v2452_v3  ;;  %v2372_v3 = vld [vmem:[%s4675_s3 + $0x10] sm:$0xff] }
 0x144   :  { %2307 = vmatpush.msra.mxu1 %v2222_v2  ;;  %2338 = vmatpush.msrb.mxu0 %v2257_v54  ;;  %v500_v42 = vpop.f32.mrf.mxu1  ;;  %v4459_v54 = vsub.f32 %v2379_v29, %v4440_v25 }
 0x145   :  { %v501_v9 = vadd.f32 %v500_v42, %v464_v50  ;;  %2397 = vmatpush.msrb.mxu2 %v4429_v43  ;;  %v4490_v42 = vand.u32 4294901760, %v2378_v15 }
 0x146   :  { %2309 = vmatpush.msra.mxu1 %v2224_v19  ;;  %v642_v63 = vpop.f32.mrf.mxu3  ;;  %v2469_v36 = vand.u32 4294901760, %v4459_v54 }
 0x147   :  { %2262 = vmatmul.f32.vlgmr.msrb.gmra.mxu1 %v4334_v53  ;;  %2288 = vmatmul.f32.vlgmr.msra.gmra.mxu0 %v2227_v37  ;;  %v542_v48 = vadd.f32 %v541_v14, %v501_v9  ;;  %v2445_v37 = vand.u32 4294901760, %v4427_v39 }
 0x148   :  { %2359 = vmatpush.msrb.mxu1 %v2222_v2  ;;  %2534 = vmatpush.msra.mxu0 %v4395_v12  ;;  %v4438_v2 = vand.u32 4294901760, %v2380_v7  ;;  %v2470_v50 = vsub.f32 %v4459_v54, %v2469_v36 }
 0x149   :  { %v643_v59 = vadd.f32 %v642_v63, %v542_v48  ;;  %v1037_v21 = vpop.f32.mrf.mxu2  ;;  %v2446_v17 = vsub.f32 %v4427_v39, %v2445_v37  ;;  %v2377_v48 = vld [vmem:[%s4675_s3 + $0x38] sm:$0xff] }
 0x14a   :  { %2361 = vmatpush.msrb.mxu1 %v2224_v19  ;;  %v696_v6 = vpop.f32.mrf.mxu0  ;;  %2537 = vmatpush.msra.mxu0 %v4406_v40  ;;  %v2435_v19 = vand.u32 4294901760, %v2434_v28  ;;  %v4456_v51 = vsub.f32 %v2380_v7, %v4438_v2 }
 0x14b   :  { %v697_v8 = vadd.f32 %v696_v6, %v643_v59  ;;  %v2447_v52 = vand.u32 4294901760, %v2446_v17  ;;  %v4499_v6 = vsub.f32 %v2378_v15, %v4490_v42  ;;  %v4501_v59 = vand.u32 4294901760, %v2377_v48 }
 0x14c   :  { %v735_v47 = vpop.f32.mrf.mxu1  ;;  %2540 = vmatpush.msra.mxu0 %v4427_v39  ;;  %2436 = vmatpush.msrb.mxu3 %v2435_v19  ;;  %v2463_v22 = vand.u32 4294901760, %v4456_v51  ;;  %v2373_v19 = vld [vmem:[%s4675_s3 + $0x18] sm:$0xff] }
 0x14d   :  { %v736_v58 = vadd.f32 %v735_v47, %v697_v8  ;;  %v2376_v8 = vld [vmem:[%s4675_s3 + $0x30] sm:$0xff]  ;;  %v4555_v17 = vand.u32 4294901760, %v2373_v19 }
 0x14e   :  { %v841_v30 = vpop.f32.mrf.mxu3  ;;  %2543 = vmatpush.msra.mxu0 %v4448_v41  ;;  %2442 = vmatpush.msrb.mxu3 %v2441_v20  ;;  %v2464_v56 = vsub.f32 %v4456_v51, %v2463_v22  ;;  %v4513_v13 = vand.u32 4294901760, %v2376_v8 }
 0x14f   :  { %2313 = vmatmul.f32.vlgmr.msra.gmra.mxu1 %v2228_v27  ;;  %2340 = vmatmul.f32.vlgmr.msrb.gmra.mxu0 %v4334_v53  ;;  %v805_v44 = vadd.f32 %v804_v24, %v736_v58  ;;  %v2471_v24 = vand.u32 4294901760, %v2470_v50  ;;  %v4569_v15 = vsub.f32 %v2373_v19, %v4555_v17 }
 0x150   :  { %2587 = vmatpush.msra.mxu1 %v4389_v23  ;;  %2448 = vmatpush.msrb.mxu3 %v2447_v52  ;;  %v2465_v63 = vand.u32 4294901760, %v2464_v56 }
 0x151   :  { %v842_v1 = vadd.f32 %v841_v30, %v805_v44  ;;  %v1223_v58 = vpop.f32.mrf.mxu2  ;;  %v2475_v44 = vand.u32 4294901760, %v4499_v6  ;;  %v4511_v30 = vsub.f32 %v2377_v48, %v4501_v59  ;;  %v2505_v48 = vand.u32 4294901760, %v4569_v15 }
 0x152   :  { %v882_v38 = vpop.f32.mrf.mxu0  ;;  %2589 = vmatpush.msra.mxu1 %v4397_v46  ;;  %2454 = vmatpush.msrb.mxu3 %v2453_v4 }
 0x153   :  { %v883_v33 = vadd.f32 %v882_v38, %v842_v1  ;;  %v2375_v38 = vld [vmem:[%s4675_s3 + $0x28] sm:$0xff]  ;;  %v2476_v1 = vsub.f32 %v4499_v6, %v2475_v44  ;;  %v2481_v49 = vand.u32 4294901760, %v4511_v30 }
 0x154   :  { %v983_v61 = vpop.f32.mrf.mxu1  ;;  %2591 = vmatpush.msra.mxu1 %v4408_v0 }
 0x155   :  { %v984_v60 = vadd.f32 %v983_v61, %v883_v33  ;;  %v4526_v61 = vsub.f32 %v2376_v8, %v4513_v13  ;;  %v4528_v33 = vand.u32 4294901760, %v2375_v38  ;;  %v2482_v7 = vsub.f32 %v4511_v30, %v2481_v49 }
 0x156   :  { %2593 = vmatpush.msra.mxu1 %v4429_v43  ;;  %v1076_v55 = vpop.f32.mrf.mxu3 }
 0x157   :  { %2363 = vmatmul.f32.vlgmr.msrb.gmra.mxu1 %v4334_v53  ;;  %v4436_v53 = vand.u32 4294901760, %v2381_v62  ;;  %v1038_v5 = vadd.f32 %v1037_v21, %v984_v60  ;;  %v2374_v60 = vld [vmem:[%s4675_s3 + $0x20] sm:$0xff]  ;;  %v2487_v21 = vand.u32 4294901760, %v4526_v61  ;;  %v4541_v28 = vsub.f32 %v2375_v38, %v4528_v33 }
 0x158   :  { %v4544_v29 = vand.u32 4294901760, %v2374_v60 }
 0x159   :  { %v4453_v27 = vsub.f32 %v2381_v62, %v4436_v53  ;;  %2399 = vmatpush.msrb.mxu2 %v4436_v53  ;;  %2595 = vmatpush.msra.mxu1 %v4436_v53  ;;  %v1077_v26 = vadd.f32 %v1076_v55, %v1038_v5  ;;  %v2477_v62 = vand.u32 4294901760, %v2476_v1  ;;  %v2483_v5 = vand.u32 4294901760, %v2482_v7  ;;  %v1486_v38 = vpop.f32.mrf.mxu2 }
 0x15a   :  { %v1145_v35 = vpop.f32.mrf.mxu0  ;;  %v2488_v55 = vsub.f32 %v4526_v61, %v2487_v21  ;;  %v2493_v20 = vand.u32 4294901760, %v4541_v28  ;;  %v4558_v52 = vsub.f32 %v2374_v60, %v4544_v29  ;;  %v2506_v1 = vsub.f32 %v4569_v15, %v2505_v48 }
 0x15b   :  { %v2457_v31 = vand.u32 4294901760, %v4453_v27  ;;  %2401 = vmatpush.msrb.mxu2 %v4438_v2  ;;  %2546 = vmatpush.msra.mxu0 %v4453_v27  ;;  %v1146_v9 = vadd.f32 %v1145_v35, %v1077_v26 }
 0x15c   :  { %2597 = vmatpush.msra.mxu1 %v4438_v2  ;;  %v1182_v45 = vpop.f32.mrf.mxu1  ;;  %v2494_v56 = vsub.f32 %v4541_v28, %v2493_v20  ;;  %v2499_v50 = vand.u32 4294901760, %v4558_v52  ;;  %v2507_v7 = vand.u32 4294901760, %v2506_v1 }
 0x15d   :  { %v2458_v32 = vsub.f32 %v4453_v27, %v2457_v31  ;;  %2403 = vmatpush.msrb.mxu2 %v4440_v25  ;;  %2549 = vmatpush.msra.mxu0 %v4456_v51  ;;  %v1183_v47 = vadd.f32 %v1182_v45, %v1146_v9  ;;  %v4571_v45 = vand.u32 4294901760, %v2372_v3  ;;  %v2371_v9 = vld [vmem:[%s4675_s3 + $0x8] sm:$0xff] }
 0x15e   :  { %2599 = vmatpush.msra.mxu1 %v4440_v25  ;;  %v1324_v57 = vpop.f32.mrf.mxu3 }
 0x15f   :  { %v2459_v14 = vand.u32 4294901760, %v2458_v32  ;;  %2405 = vmatpush.msrb.mxu2 %v4490_v42  ;;  %2552 = vmatpush.msra.mxu0 %v4459_v54  ;;  %v1224_v16 = vadd.f32 %v1223_v58, %v1183_v47  ;;  %v2489_v32 = vand.u32 4294901760, %v2488_v55  ;;  %v4584_v47 = vand.u32 4294901760, %v2371_v9 }
 0x160   :  { %2601 = vmatpush.msra.mxu1 %v4490_v42  ;;  %v2500_v58 = vsub.f32 %v4558_v52, %v2499_v50 }
 0x161   :  { %2460 = vmatpush.msrb.mxu3 %v2459_v14  ;;  %2407 = vmatpush.msrb.mxu2 %v4501_v59  ;;  %v1325_v35 = vadd.f32 %v1324_v57, %v1224_v16  ;;  %v2495_v14 = vand.u32 4294901760, %v2494_v56  ;;  %v4600_v60 = vsub.f32 %v2371_v9, %v4584_v47 }
 0x162   :  { %2555 = vmatpush.msra.mxu0 %v4499_v6  ;;  %2603 = vmatpush.msra.mxu1 %v4501_v59  ;;  %v1378_v34 = vpop.f32.mrf.mxu0 }
 0x163   :  { %2466 = vmatpush.msrb.mxu3 %v2465_v63  ;;  %2409 = vmatpush.msrb.mxu2 %v4513_v13  ;;  %v1379_v4 = vadd.f32 %v1378_v34, %v1325_v35  ;;  %v4582_v63 = vsub.f32 %v2372_v3, %v4571_v45  ;;  %v2517_v34 = vand.u32 4294901760, %v4600_v60 }
 0x164   :  { %2558 = vmatpush.msra.mxu0 %v4511_v30  ;;  %2605 = vmatpush.msra.mxu1 %v4513_v13  ;;  %v1417_v26 = vpop.f32.mrf.mxu1 }
 0x165   :  { %2472 = vmatpush.msrb.mxu3 %v2471_v24  ;;  %2411 = vmatpush.msrb.mxu2 %v4528_v33  ;;  %v1418_v8 = vadd.f32 %v1417_v26, %v1379_v4  ;;  %v2370_v24 = vld [vmem:[%s4675_s3] sm:$0xff]  ;;  %v2511_v16 = vand.u32 4294901760, %v4582_v63  ;;  %v2518_v26 = vsub.f32 %v4600_v60, %v2517_v34 }
 0x166   :  { %2561 = vmatpush.msra.mxu0 %v4526_v61  ;;  %2607 = vmatpush.msra.mxu1 %v4528_v33  ;;  %v4602_v57 = vand.u32 4294901760, %v2370_v24  ;;  %v1523_v35 = vpop.f32.mrf.mxu3 }
 0x167   :  { %2478 = vmatpush.msrb.mxu3 %v2477_v62  ;;  %2413 = vmatpush.msrb.mxu2 %v4544_v29  ;;  %v2501_v62 = vand.u32 4294901760, %v2500_v58  ;;  %v2512_v19 = vsub.f32 %v4582_v63, %v2511_v16  ;;  %v1487_v55 = vadd.f32 %v1486_v38, %v1418_v8  ;;  %v2519_v4 = vand.u32 4294901760, %v2518_v26 }
 0x168   :  { %2564 = vmatpush.msra.mxu0 %v4541_v28  ;;  %2609 = vmatpush.msra.mxu1 %v4544_v29 }
 0x169   :  { %2484 = vmatpush.msrb.mxu3 %v2483_v5  ;;  %2415 = vmatpush.msrb.mxu2 %v4555_v17  ;;  %v4612_v5 = vsub.f32 %v2370_v24, %v4602_v57  ;;  %v2513_v3 = vand.u32 4294901760, %v2512_v19 }
 0x16a   :  { %2567 = vmatpush.msra.mxu0 %v4558_v52  ;;  %2611 = vmatpush.msra.mxu1 %v4555_v17 }
 0x16b   :  { %2490 = vmatpush.msrb.mxu3 %v2489_v32  ;;  %2417 = vmatpush.msrb.mxu2 %v4571_v45  ;;  %v2523_v32 = vand.u32 4294901760, %v4612_v5 }
 0x16c   :  { %2570 = vmatpush.msra.mxu0 %v4569_v15  ;;  %2613 = vmatpush.msra.mxu1 %v4571_v45 }
 0x16d   :  { %2496 = vmatpush.msrb.mxu3 %v2495_v14  ;;  %2419 = vmatpush.msrb.mxu2 %v4584_v47  ;;  %v2524_v9 = vsub.f32 %v4612_v5, %v2523_v32  ;;  %v1524_v14 = vadd.f32 %v1523_v35, %v1487_v55 }
 0x16e   :  { %2573 = vmatpush.msra.mxu0 %v4582_v63  ;;  %2615 = vmatpush.msra.mxu1 %v4584_v47  ;;  %v2755_v63 = vld [vmem:[%s4676_s4] ss:$0 sm:$0xff] }
 0x16f   :  { %2502 = vmatpush.msrb.mxu3 %v2501_v62  ;;  %2421 = vmatpush.msrb.mxu2 %v4602_v57  ;;  %v2525_v58 = vand.u32 4294901760, %v2524_v9 }
 0x170   :  { %2576 = vmatpush.msra.mxu0 %v4600_v60  ;;  %2617 = vmatpush.msra.mxu1 %v4602_v57  ;;  %v1564_v56 = vpop.f32.mrf.mxu0 }
 0x171   :  { %2628 = vmatpush.msra.mxu2 %v2433_v18  ;;  %2508 = vmatpush.msrb.mxu3 %v2507_v7  ;;  %v1565_v12 = vadd.f32 %v1564_v56, %v1524_v14 }
 0x172   :  { %2579 = vmatpush.msra.mxu0 %v4612_v5 }
 0x173   :  { %2632 = vmatpush.msra.mxu2 %v2439_v10  ;;  %2514 = vmatpush.msrb.mxu3 %v2513_v3 }
 0x175   :  { %2636 = vmatpush.msra.mxu2 %v2445_v37  ;;  %2520 = vmatpush.msrb.mxu3 %v2519_v4 }
 0x177   :  { %2640 = vmatpush.msra.mxu2 %v2451_v11  ;;  %2526 = vmatpush.msrb.mxu3 %v2525_v58 }
 0x179   :  { %2695 = vmatpush.msra.mxu3 %v4389_v23  ;;  %2644 = vmatpush.msra.mxu2 %v2457_v31 }
 0x17a   :  { %v1665_v8 = vpop.f32.mrf.mxu1  ;;  %v1719_v24 = vpop.f32.mrf.mxu2 }
 0x17b   :  { %v1666_v18 = vadd.f32 %v1665_v8, %v1565_v12  ;;  %2697 = vmatpush.msra.mxu3 %v4397_v46  ;;  %2648 = vmatpush.msra.mxu2 %v2463_v22 }
 0x17d   :  { %v1720_v40 = vadd.f32 %v1719_v24, %v1666_v18  ;;  %v1758_v10 = vpop.f32.mrf.mxu3  ;;  %2699 = vmatpush.msra.mxu3 %v4408_v0  ;;  %2652 = vmatpush.msra.mxu2 %v2469_v36 }
 0x17f   :  { %2701 = vmatpush.msra.mxu3 %v4429_v43  ;;  %2656 = vmatpush.msra.mxu2 %v2475_v44  ;;  %v1759_v23 = vadd.f32 %v1758_v10, %v1720_v40 }
 0x181   :  { %2703 = vmatpush.msra.mxu3 %v4436_v53  ;;  %2660 = vmatpush.msra.mxu2 %v2481_v49 }
 0x183   :  { %2705 = vmatpush.msra.mxu3 %v4438_v2  ;;  %2664 = vmatpush.msra.mxu2 %v2487_v21 }
 0x185   :  { %2707 = vmatpush.msra.mxu3 %v4440_v25  ;;  %2668 = vmatpush.msra.mxu2 %v2493_v20 }
 0x187   :  { %2709 = vmatpush.msra.mxu3 %v4490_v42  ;;  %2672 = vmatpush.msra.mxu2 %v2499_v50 }
 0x189   :  { %2711 = vmatpush.msra.mxu3 %v4501_v59  ;;  %2676 = vmatpush.msra.mxu2 %v2505_v48 }
 0x18b   :  { %2713 = vmatpush.msra.mxu3 %v4513_v13  ;;  %2680 = vmatpush.msra.mxu2 %v2511_v16 }
 0x18d   :  { %2715 = vmatpush.msra.mxu3 %v4528_v33  ;;  %2684 = vmatpush.msra.mxu2 %v2517_v34 }
 0x18f   :  { %2717 = vmatpush.msra.mxu3 %v4544_v29  ;;  %2688 = vmatpush.msra.mxu2 %v2523_v32 }
 0x191   :  { %2719 = vmatpush.msra.mxu3 %v4555_v17 }
 0x192   :  { %v1827_v39 = vpop.f32.mrf.mxu0 }
 0x193   :  { %v1828_v46 = vadd.f32 %v1827_v39, %v1759_v23  ;;  %2721 = vmatpush.msra.mxu3 %v4571_v45 }
 0x195   :  { %2723 = vmatpush.msra.mxu3 %v4584_v47 }
 0x197   :  { %2725 = vmatpush.msra.mxu3 %v4602_v57 }
 0x19c   :  { %v1864_v37 = vpop.f32.mrf.mxu1  ;;  %v1905_v41 = vpop.f32.mrf.mxu2 }
 0x19d   :  { %v1865_v0 = vadd.f32 %v1864_v37, %v1828_v46 }
 0x19f   :  { %v1906_v53 = vadd.f32 %v1905_v41, %v1865_v0  ;;  %v2006_v27 = vpop.f32.mrf.mxu3 }
 0x1a1   :  { %v2007_v2 = vadd.f32 %v2006_v27, %v1906_v53 }
 0x1b4   :  { %v2060_v43 = vpop.f32.mrf.mxu0 }
 0x1b5   :  { %v2061_v25 = vadd.f32 %v2060_v43, %v2007_v2 }
 0x1bc   :  { %v2099_v51 = vpop.f32.mrf.mxu1  ;;  %v2232_v54 = vpop.f32.mrf.mxu0 }
 0x1bd   :  { %v2100_v11 = vadd.f32 %v2099_v51, %v2061_v25 }
 0x1be   :  { %v2168_v31 = vpop.f32.mrf.mxu2 }
 0x1bf   :  { %v2169_v22 = vadd.f32 %v2168_v31, %v2100_v11 }
 0x1c0   :  { %v2205_v36 = vpop.f32.mrf.mxu3 }
 0x1c1   :  { %v2206_v42 = vadd.f32 %v2205_v36, %v2169_v22 }
 0x1c3   :  { %v2233_v59 = vadd.f32 %v2232_v54, %v2206_v42 }
 0x1c4   :  { %v2263_v6 = vpop.f32.mrf.mxu1  ;;  %v2289_v44 = vpop.f32.mrf.mxu0 }
 0x1c5   :  { %v2264_v30 = vadd.f32 %v2263_v6, %v2233_v59 }
 0x1c7   :  { %v2290_v49 = vadd.f32 %v2289_v44, %v2264_v30 }
 0x1cc   :  { %v2314_v13 = vpop.f32.mrf.mxu1  ;;  %v2341_v33 = vpop.f32.mrf.mxu0 }
 0x1cd   :  { %v2315_v61 = vadd.f32 %v2314_v13, %v2290_v49 }
 0x1cf   :  { %v2342_v21 = vadd.f32 %v2341_v33, %v2315_v61 }
 0x1d4   :  { %v2364_v28 = vpop.f32.mrf.mxu1 }
 0x1d5   :  { %v2365_v29 = vadd.f32 %v2364_v28, %v2342_v21 }
 0x1d7   :  { %vm2367_vm1 = vcmp.ge.f32.partialorder %v2365_v29, 0.0  ;;  %v2368_v20 = vmul.f32 0.1, %v2365_v29 }
 0x1d9   :  { %v2369_v17 = vsel %vm2367_vm1, %v2365_v29, %v2368_v20 }
 0x1da   :  { %v2422_v52 = vand.u32 4294901760, %v2369_v17 }
 0x1dc   :  { %v2423_v15 = vsub.f32 %v2369_v17, %v2422_v52  ;;  %2528 = vmatmul.f32.vlgmr.msrb.gmra.mxu3 %v2422_v52 }
 0x1de   :  { %2582 = vmatmul.f32.vlgmr.msra.gmra.mxu0 %v2423_v15  ;;  %v2424_v45 = vand.u32 4294901760, %v2423_v15 }
 0x1e0   :  { %2621 = vmatmul.f32.vlgmr.msra.gmra.mxu1 %v2424_v45  ;;  %v2425_v50 = vsub.f32 %v2423_v15, %v2424_v45 }
 0x1e2   :  { %v2426_v48 = vand.u32 4294901760, %v2425_v50 }
 0x1e4   :  { %2427 = vmatmul.f32.vlgmr.msrb.gmra.mxu2 %v2426_v48  ;;  %2727 = vmatmul.f32.vlgmr.msra.gmra.mxu3 %v2422_v52 }
 0x1ec   :  { %2690 = vmatmul.f32.vlgmr.msra.gmra.mxu2 %v2422_v52 }
 0x25b   :  { %v2583_v60 = vpop.f32.mrf.mxu0 }
 0x25d   :  { %v2622_v62 = vpop.f32.mrf.mxu1 }
 0x25f   :  { %v2529_v47 = vpop.f32.mrf.mxu3 }
 0x267   :  { %v2428_v38 = vpop.f32.mrf.mxu2  ;;  %v2728_v5 = vpop.f32.mrf.mxu3 }
 0x268   :  { %v2429_v1 = vadd.f32 %v2755_v63, %v2428_v38 }
 0x26a   :  { %v2530_v16 = vadd.f32 %v2529_v47, %v2429_v1 }
 0x26c   :  { %v2584_v57 = vadd.f32 %v2583_v60, %v2530_v16 }
 0x26e   :  { %v2623_v7 = vadd.f32 %v2622_v62, %v2584_v57 }
 0x26f   :  { %v2691_v19 = vpop.f32.mrf.mxu2 }
 0x270   :  { %v2692_v34 = vadd.f32 %v2691_v19, %v2623_v7 }
 0x272   :  { %v2729_v55 = vadd.f32 %v2728_v5, %v2692_v34 }
 0x274   :  { %2732 = vst.msk [vmem:[#allocation5] sm:$0x3] %vm2731_vm2, %v2729_v55 }
 0x275   :  { %2743 = dma.vmem_to_hbm [thread:$0]  %s2739_s9, 32, %s2741_s12, [#allocation4]  }
 0x276   :  { %2806 = dma.done.wait [#allocation4], 32  }
 0x277   :  { %2807 = vsyncadd [#allocation4], 4294967264 }
 0x278   :  { %2748 = vsyncpa [#allocation3], 1 }
 0x279   :  { %2749 = vsyncpa [#allocation4], 1 }

</bundles_post_ra>
